<compile_context>
chip_gen: v6e
topology: v6e:2x2x1
jax: 0.10.0
libtpu: 0.0.40
codegen_flags: <defaults>
</compile_context>

<pallas_src>
import jax
import jax.numpy as jnp
from jax.experimental import pallas as pl
from jax.experimental.pallas import tpu as pltpu

_LANE = 128      # vreg lane width: feature dims padded to a multiple of this
_SUBLANE = 8     # f32 sublane width: row tiles must be a multiple of this


def _round_up(v, m):
    return ((v + m - 1) // m) * m


def _tpu_vmem_and_cores():
    """Best-effort (vmem_capacity_bytes, tensorcores_per_chip)."""
    kind = ""
    try:
        kind = jax.devices()[0].device_kind.lower()
    except Exception:
        pass
    is_v7 = "7" in kind
    cap = None
    try:
        cap = int(getattr(pltpu.get_tpu_info(), "vmem_capacity_bytes", 0)) or None
    except Exception:
        cap = None
    if cap is None:
        # Generation-aware fallback: only v7x has 64 MiB per core; v5e/v6e
        # (and v4/v5p) expose 128 MiB.
        cap = (64 << 20) if is_v7 else (128 << 20)
    num_cores = 2 if (is_v7 or "v4" in kind or "v5p" in kind) else 1
    return cap, num_cores


def _pick_block_rows(n_rows, per_row_bytes, weight_bytes, vmem_cap, num_cores):
    """Largest row tile such that (single-buffered weights) + ~4 copies of the
    f32 row intermediates fit in ~60% of VMEM.  Capped per generation, rounded
    to a multiple of 128 (8 when small), and capped so multi-core chips (v7x)
    keep >= num_cores grid steps."""
    budget = (vmem_cap * 3) // 5 - weight_bytes - (8 << 20)
    budget = max(budget, 1 << 20)
    rows = budget // max(4 * per_row_bytes, 1)
    cap = 4096 if vmem_cap >= (96 << 20) else 2048   # v5e/v6e vs v7x
    rows = min(rows, cap)
    n_eff = _round_up(max(n_rows, _SUBLANE), _SUBLANE)
    if num_cores > 1:
        rows = min(rows, max(pl.cdiv(n_eff, num_cores), _SUBLANE))
    rows = max(_SUBLANE, min(rows, n_eff))
    if rows >= _LANE:
        rows = (rows // _LANE) * _LANE
    else:
        rows = (rows // _SUBLANE) * _SUBLANE
    return int(rows)


def _spec_with_buffers(shape, index_map, buffers):
    """BlockSpec with an optional explicit pipeline buffer count."""
    if buffers is not None and hasattr(pl, "Buffered"):
        try:
            return pl.BlockSpec(shape, index_map,
                                pipeline_mode=pl.Buffered(int(buffers)))
        except TypeError:
            pass
    return pl.BlockSpec(shape, index_map)


def _const_map(ndim):
    zero = (0,) * ndim
    return lambda i, _z=zero: _z


# ----------------------------------------------------------------------------
# Host-side parameter preparation: lane-pad + split decoder first-layer weight.
# ----------------------------------------------------------------------------
def _pad_weight(w, rows, cols, dtype):
    r, c = w.shape
    return jnp.pad(w, ((0, rows - r), (0, cols - c))).astype(dtype)


def _pad_bias(b, cols):
    b = jnp.reshape(b, (1, -1))
    return jnp.pad(b, ((0, 0), (0, cols - b.shape[1]))).astype(jnp.float32)


def _prepare_params(enc_params, dec_params, latent_dim, compute_dtype):
    """Flat layout: [w, b]*enc + [wd1_z, wd1_e, bd1] + [w, b]*dec_rest.
    Zero-padding propagates exactly through Linear(+bias)+ReLU, so padded
    columns stay exactly zero end-to-end."""
    flat, widths = [], []
    macs = 0

    # ---- encoder (ReLU after every layer, incl. latent projection).
    # Layer 1 consumes the host pre-concatenated [x, emb] stream directly.
    prev = enc_params[0][0].shape[0]
    for idx, (w, b) in enumerate(enc_params):
        cp = _round_up(w.shape[1], _LANE)
        rows = w.shape[0] if idx == 0 else prev
        flat += [_pad_weight(w, rows, cp, compute_dtype), _pad_bias(b, cp)]
        macs += rows * cp
        widths.append(cp)
        prev = cp
    latent_pad = prev

    # ---- decoder layer 1: fused concat([z, emb]) via split weights ----
    wd1, bd1 = dec_params[0]
    batch_dim = wd1.shape[0] - latent_dim
    hd1p = _round_up(wd1.shape[1], _LANE)
    flat += [_pad_weight(wd1[:latent_dim], latent_pad, hd1p, compute_dtype),
             _pad_weight(wd1[latent_dim:], batch_dim, hd1p, compute_dtype),
             _pad_bias(bd1, hd1p)]
    macs += (latent_pad + batch_dim) * hd1p
    widths.append(hd1p)
    prev = hd1p

    # ---- remaining decoder layers (ReLU on all but the last) ----
    for w, b in dec_params[1:]:
        cp = _round_up(w.shape[1], _LANE)
        flat += [_pad_weight(w, prev, cp, compute_dtype), _pad_bias(b, cp)]
        macs += prev * cp
        widths.append(cp)
        prev = cp

    meta = dict(n_enc=len(enc_params), n_dec=len(dec_params),
                widths_pad=widths, out_pad=prev, macs_per_row=macs)
    return flat, meta


# ----------------------------------------------------------------------------
# Fused kernel: full encoder + decoder chain for one row tile.
# ----------------------------------------------------------------------------
def _make_cae_kernel(n_enc, n_dec, compute_dtype):
    def kernel(xe_ref, e_ref, *refs):
        o_ref = refs[-1]
        p = refs[:-1]
        i = 0
        e = e_ref[...]
        h = xe_ref[...]          # (rows, in+batch), compute dtype (bf16)

        # encoder: Linear + ReLU on every layer (incl. latent projection);
        # accumulate in f32, cast back to compute dtype once per layer.
        for _ in range(n_enc):
            w, b = p[i], p[i + 1]
            i += 2
            acc = jnp.dot(h, w[...], preferred_element_type=jnp.float32) + b[...]
            h = jnp.maximum(acc, 0.0).astype(compute_dtype)

        # decoder layer 1: fused concat([z, emb]) via split weights
        w_z, w_e, b = p[i], p[i + 1], p[i + 2]
        i += 3
        acc = (jnp.dot(h, w_z[...], preferred_element_type=jnp.float32)
               + jnp.dot(e, w_e[...], preferred_element_type=jnp.float32)
               + b[...])

        # remaining decoder layers; the LAST one has no ReLU
        for _ in range(n_dec - 1):
            h = jnp.maximum(acc, 0.0).astype(compute_dtype)
            w, b = p[i], p[i + 1]
            i += 2
            acc = jnp.dot(h, w[...], preferred_element_type=jnp.float32) + b[...]

        o_ref[...] = acc.astype(o_ref.dtype)

    return kernel


# ----------------------------------------------------------------------------
# Wrapper mirroring ConditionalAutoencoderML.forward
# ----------------------------------------------------------------------------
def conditional_autoencoder_forward(x, batch_index, enc_params, dec_params,
                                    embedding, *, block_rows=None,
                                    compute_dtype=jnp.bfloat16, out_dtype=None,
                                    row_buffers=None):
    """x: (N, in_channels), batch_index: (N, 1) int32 -> (N, in_channels).

    compute_dtype defaults to bf16 (MXU-native; f32 accumulation).  The output
    dtype defaults to compute_dtype to halve writeback bytes; pass
    out_dtype=x.dtype for an f32 result.  row_buffers lets callers sweep the
    pipeline depth of the row streams (e.g. 3) on HBM-bandwidth-limited parts."""
    n, in_ch = x.shape
    out_ch = dec_params[-1][0].shape[1]
    latent_dim = enc_params[-1][0].shape[1]
    batch_dim = embedding.shape[1]
    cdt = jnp.dtype(compute_dtype)
    odt = jnp.dtype(out_dtype) if out_dtype is not None else cdt

    # Tiny glue in plain JAX: gather the (N, batch_dim) embedding rows and
    # pre-concatenate them with x (single first-layer input stream).  The
    # decoder-side concat of [z, emb] stays fused in-kernel via split weights.
    e_rows = jnp.take(embedding, jnp.reshape(batch_index, (-1,)), axis=0)
    xe = jnp.concatenate([x.astype(cdt), e_rows.astype(cdt)], axis=-1)
    e_rows = e_rows.astype(cdt)
    in_w = in_ch + batch_dim

    flat_params, meta = _prepare_params(enc_params, dec_params, latent_dim, cdt)
    out_pad = meta["out_pad"]

    weight_bytes = sum(int(a.size) * a.dtype.itemsize for a in flat_params)
    per_row_bytes = 4 * (in_w + batch_dim + sum(meta["widths_pad"]))
    vmem_cap, num_cores = _tpu_vmem_and_cores()

    if block_rows is None:
        block_rows = _pick_block_rows(n, per_row_bytes, weight_bytes,
                                      vmem_cap, num_cores)
    block_rows = max(_SUBLANE, (int(block_rows) // _SUBLANE) * _SUBLANE)

    n_pad = _round_up(max(n, block_rows), block_rows)
    if n_pad != n:
        xe = jnp.pad(xe, ((0, n_pad - n), (0, 0)))
        e_rows = jnp.pad(e_rows, ((0, n_pad - n), (0, 0)))

    grid = (n_pad // block_rows,)

    def row_spec(width):
        return _spec_with_buffers((block_rows, width), lambda i: (i, 0),
                                  row_buffers)

    kernel = _make_cae_kernel(meta["n_enc"], meta["n_dec"], cdt)

    # Scheduler hint for XLA around the custom call.
    cost = pl.CostEstimate(
        flops=int(2 * n_pad * meta["macs_per_row"]),
        transcendentals=0,
        bytes_accessed=int(n_pad * (in_w + batch_dim) * cdt.itemsize
                           + weight_bytes + n_pad * out_pad * odt.itemsize),
    )

    # Single-buffered weights + margin for the unrolled f32 intermediates.
    est_vmem = weight_bytes + 4 * block_rows * per_row_bytes + (8 << 20)
    vmem_limit = int(min(max(est_vmem, 16 << 20), (vmem_cap * 3) // 4))

    def _call(param_buffers):
        in_specs = ([row_spec(in_w), row_spec(batch_dim)]
                    + [_spec_with_buffers(a.shape, _const_map(a.ndim),
                                          param_buffers)
                       for a in flat_params])
        return pl.pallas_call(
            kernel,
            out_shape=jax.ShapeDtypeStruct((n_pad, out_pad), odt),
            grid=grid,
            in_specs=in_specs,
            out_specs=row_spec(out_pad),
            compiler_params=pltpu.CompilerParams(
                dimension_semantics=("parallel",),
                vmem_limit_bytes=vmem_limit),
            cost_estimate=cost,
        )(xe, e_rows, *flat_params)

    try:
        # Constant index maps -> weights stay VMEM-resident; a second pipeline
        # buffer for them is pure VMEM waste, so request single buffering.
        out = _call(1)
    except Exception:
        out = _call(None)   # fall back to default pipelining

    return out[:n, :out_ch]


# ----------------------------------------------------------------------------
# Pure-JAX reference (mirrors the PyTorch module exactly, f32).
# ----------------------------------------------------------------------------
def reference_forward(x, batch_index, enc_params, dec_params, embedding):
    e = jnp.take(embedding, jnp.reshape(batch_index, (-1,)), axis=0)
    h = jnp.concatenate([x, e], axis=-1)
    for w, b in enc_params:                      # encoder: ReLU on every layer
        h = jnp.maximum(h @ w + b, 0.0)
    h = jnp.concatenate([h, e], axis=-1)         # decoder: concat [z, emb]
    for w, b in dec_params[:-1]:                 # ReLU on all but last
        h = jnp.maximum(h @ w + b, 0.0)
    w, b = dec_params[-1]
    return h @ w + b


# ----------------------------------------------------------------------------
# Deterministic synthetic parameter initialization (PyTorch Linear-style).
# ----------------------------------------------------------------------------
def init_params(key, in_channels, batch_dim, latent_dim, hidden_dims,
                num_batches, dtype=jnp.float32):
    enc_dims = [in_channels + batch_dim] + list(hidden_dims) + [latent_dim]
    dec_dims = [latent_dim + batch_dim] + list(hidden_dims) + [in_channels]
    n_layers = (len(enc_dims) - 1) + (len(dec_dims) - 1)
    keys = jax.random.split(key, 2 * n_layers + 1)

    def make_layers(dims, key_offset):
        params = []
        k = key_offset
        for fan_in, fan_out in zip(dims[:-1], dims[1:]):
            bound = 1.0 / float(fan_in) ** 0.5
            w = jax.random.uniform(keys[k], (fan_in, fan_out), dtype,
                                   minval=-bound, maxval=bound)
            b = jax.random.uniform(keys[k + 1], (fan_out,), dtype,
                                   minval=-bound, maxval=bound)
            params.append((w, b))
            k += 2
        return params, k

    enc_params, k = make_layers(enc_dims, 0)
    dec_params, k = make_layers(dec_dims, k)
    embedding = jax.random.normal(keys[k], (num_batches, batch_dim), dtype)
    return enc_params, dec_params, embedding


if __name__ == "__main__":
    N = 256
    IN_CHANNELS = 16
    BATCH_DIM = 4
    LATENT_DIM = 8
    HIDDEN_DIMS = [32, 24]
    NUM_BATCHES = 5

    key = jax.random.PRNGKey(0)
    k_params, k_x, k_idx = jax.random.split(key, 3)

    enc_params, dec_params, embedding = init_params(
        k_params, IN_CHANNELS, BATCH_DIM, LATENT_DIM, HIDDEN_DIMS, NUM_BATCHES)

    x = jax.random.normal(k_x, (N, IN_CHANNELS), jnp.float32)
    batch_index = jax.random.randint(k_idx, (N, 1), 0, NUM_BATCHES,
                                     dtype=jnp.int32)

    # block_rows=64 -> grid=(4,): exercises the row pipeline / multi-core
    # sharding even at this small demo size.  Leave block_rows=None for the
    # VMEM/generation-derived tile on real workloads.
    out = conditional_autoencoder_forward(x, batch_index, enc_params,
                                          dec_params, embedding,
                                          block_rows=64)
    out = jax.block_until_ready(out)

    ref = reference_forward(x, batch_index, enc_params, dec_params, embedding)
    assert out.shape == (N, IN_CHANNELS), out.shape
    out_f32 = out.astype(jnp.float32)
    max_err = float(jnp.max(jnp.abs(out_f32 - ref)))
    # bf16 MXU compute + bf16 output: loosened tolerance vs the f32 reference.
    assert jnp.allclose(out_f32, ref, atol=5e-2, rtol=5e-2), (
        f"mismatch vs reference (max abs err {max_err})")

    # TODO(synk): the module's `loss` (F.mse_loss) is not part of forward and is
    # left to plain JAX.
    print("KERNEL_OK")
</pallas_src>

<mosaic_0001>
module attributes {stable_mosaic.version = 11 : i64} {
  func.func @kernel(%arg0: i32, %arg1: memref<64x20xbf16, #tpu.memory_space<vmem>>, %arg2: memref<64x4xbf16, #tpu.memory_space<vmem>>, %arg3: memref<20x128xbf16, #tpu.memory_space<vmem>>, %arg4: memref<1x128xf32, #tpu.memory_space<vmem>>, %arg5: memref<128x128xbf16, #tpu.memory_space<vmem>>, %arg6: memref<1x128xf32, #tpu.memory_space<vmem>>, %arg7: memref<128x128xbf16, #tpu.memory_space<vmem>>, %arg8: memref<1x128xf32, #tpu.memory_space<vmem>>, %arg9: memref<128x128xbf16, #tpu.memory_space<vmem>>, %arg10: memref<4x128xbf16, #tpu.memory_space<vmem>>, %arg11: memref<1x128xf32, #tpu.memory_space<vmem>>, %arg12: memref<128x128xbf16, #tpu.memory_space<vmem>>, %arg13: memref<1x128xf32, #tpu.memory_space<vmem>>, %arg14: memref<128x128xbf16, #tpu.memory_space<vmem>>, %arg15: memref<1x128xf32, #tpu.memory_space<vmem>>, %arg16: memref<64x128xbf16, #tpu.memory_space<vmem>>) attributes {dimension_semantics = [#tpu.dimension_semantics<parallel>], iteration_bounds = array<i64: 4>, scalar_prefetch = 0 : i64, scratch_operands = 0 : i64, tpu.core_type = #tpu.core_type<tc>, window_params = [{transform_indices = @transform_0, window_bounds = array<i64: 64, 20>}, {transform_indices = @transform_1, window_bounds = array<i64: 64, 4>}, {pipeline_mode = #tpu.pipeline_mode<synchronous>, transform_indices = @transform_2, window_bounds = array<i64: 20, 128>}, {pipeline_mode = #tpu.pipeline_mode<synchronous>, transform_indices = @transform_3, window_bounds = array<i64: 1, 128>}, {pipeline_mode = #tpu.pipeline_mode<synchronous>, transform_indices = @transform_4, window_bounds = array<i64: 128, 128>}, {pipeline_mode = #tpu.pipeline_mode<synchronous>, transform_indices = @transform_5, window_bounds = array<i64: 1, 128>}, {pipeline_mode = #tpu.pipeline_mode<synchronous>, transform_indices = @transform_6, window_bounds = array<i64: 128, 128>}, {pipeline_mode = #tpu.pipeline_mode<synchronous>, transform_indices = @transform_7, window_bounds = array<i64: 1, 128>}, {pipeline_mode = #tpu.pipeline_mode<synchronous>, transform_indices = @transform_8, window_bounds = array<i64: 128, 128>}, {pipeline_mode = #tpu.pipeline_mode<synchronous>, transform_indices = @transform_9, window_bounds = array<i64: 4, 128>}, {pipeline_mode = #tpu.pipeline_mode<synchronous>, transform_indices = @transform_10, window_bounds = array<i64: 1, 128>}, {pipeline_mode = #tpu.pipeline_mode<synchronous>, transform_indices = @transform_11, window_bounds = array<i64: 128, 128>}, {pipeline_mode = #tpu.pipeline_mode<synchronous>, transform_indices = @transform_12, window_bounds = array<i64: 1, 128>}, {pipeline_mode = #tpu.pipeline_mode<synchronous>, transform_indices = @transform_13, window_bounds = array<i64: 128, 128>}, {pipeline_mode = #tpu.pipeline_mode<synchronous>, transform_indices = @transform_14, window_bounds = array<i64: 1, 128>}, {transform_indices = @transform_15, window_bounds = array<i64: 64, 128>}]} {
    %c0 = arith.constant 0 : index
    %c0_0 = arith.constant 0 : index
    %0 = vector.load %arg2[%c0, %c0_0] : memref<64x4xbf16, #tpu.memory_space<vmem>>, vector<64x4xbf16>
    %c0_1 = arith.constant 0 : index
    %c0_2 = arith.constant 0 : index
    %1 = vector.load %arg1[%c0_1, %c0_2] : memref<64x20xbf16, #tpu.memory_space<vmem>>, vector<64x20xbf16>
    %c0_3 = arith.constant 0 : index
    %c0_4 = arith.constant 0 : index
    %2 = vector.load %arg3[%c0_3, %c0_4] : memref<20x128xbf16, #tpu.memory_space<vmem>>, vector<20x128xbf16>
    %cst = arith.constant dense<0.000000e+00> : vector<64x128xf32>
    %3 = tpu.matmul %1, %2, %cst {dimension_numbers = #tpu.dot_dimension_numbers<[1], [0], [0], [1], [0, 0, 1, 1], [], []>} : vector<64x20xbf16>, vector<20x128xbf16>, vector<64x128xf32> -> vector<64x128xf32>
    %c0_5 = arith.constant 0 : index
    %c0_6 = arith.constant 0 : index
    %4 = vector.load %arg4[%c0_5, %c0_6] : memref<1x128xf32, #tpu.memory_space<vmem>>, vector<1x128xf32>
    %5 = vector.broadcast %4 : vector<1x128xf32> to vector<64x128xf32>
    %6 = arith.addf %3, %5 : vector<64x128xf32>
    %cst_7 = arith.constant 0.000000e+00 : f32
    %7 = vector.broadcast %cst_7 : f32 to vector<64x128xf32>
    %8 = arith.maximumf %6, %7 : vector<64x128xf32>
    %9 = arith.truncf %8 : vector<64x128xf32> to vector<64x128xbf16>
    %c0_8 = arith.constant 0 : index
    %c0_9 = arith.constant 0 : index
    %10 = vector.load %arg5[%c0_8, %c0_9] : memref<128x128xbf16, #tpu.memory_space<vmem>>, vector<128x128xbf16>
    %cst_10 = arith.constant dense<0.000000e+00> : vector<64x128xf32>
    %11 = tpu.matmul %9, %10, %cst_10 {dimension_numbers = #tpu.dot_dimension_numbers<[1], [0], [0], [1], [0, 0, 1, 1], [], []>} : vector<64x128xbf16>, vector<128x128xbf16>, vector<64x128xf32> -> vector<64x128xf32>
    %c0_11 = arith.constant 0 : index
    %c0_12 = arith.constant 0 : index
    %12 = vector.load %arg6[%c0_11, %c0_12] : memref<1x128xf32, #tpu.memory_space<vmem>>, vector<1x128xf32>
    %13 = vector.broadcast %12 : vector<1x128xf32> to vector<64x128xf32>
    %14 = arith.addf %11, %13 : vector<64x128xf32>
    %cst_13 = arith.constant 0.000000e+00 : f32
    %15 = vector.broadcast %cst_13 : f32 to vector<64x128xf32>
    %16 = arith.maximumf %14, %15 : vector<64x128xf32>
    %17 = arith.truncf %16 : vector<64x128xf32> to vector<64x128xbf16>
    %c0_14 = arith.constant 0 : index
    %c0_15 = arith.constant 0 : index
    %18 = vector.load %arg7[%c0_14, %c0_15] : memref<128x128xbf16, #tpu.memory_space<vmem>>, vector<128x128xbf16>
    %cst_16 = arith.constant dense<0.000000e+00> : vector<64x128xf32>
    %19 = tpu.matmul %17, %18, %cst_16 {dimension_numbers = #tpu.dot_dimension_numbers<[1], [0], [0], [1], [0, 0, 1, 1], [], []>} : vector<64x128xbf16>, vector<128x128xbf16>, vector<64x128xf32> -> vector<64x128xf32>
    %c0_17 = arith.constant 0 : index
    %c0_18 = arith.constant 0 : index
    %20 = vector.load %arg8[%c0_17, %c0_18] : memref<1x128xf32, #tpu.memory_space<vmem>>, vector<1x128xf32>
    %21 = vector.broadcast %20 : vector<1x128xf32> to vector<64x128xf32>
    %22 = arith.addf %19, %21 : vector<64x128xf32>
    %cst_19 = arith.constant 0.000000e+00 : f32
    %23 = vector.broadcast %cst_19 : f32 to vector<64x128xf32>
    %24 = arith.maximumf %22, %23 : vector<64x128xf32>
    %25 = arith.truncf %24 : vector<64x128xf32> to vector<64x128xbf16>
    %c0_20 = arith.constant 0 : index
    %c0_21 = arith.constant 0 : index
    %26 = vector.load %arg9[%c0_20, %c0_21] : memref<128x128xbf16, #tpu.memory_space<vmem>>, vector<128x128xbf16>
    %cst_22 = arith.constant dense<0.000000e+00> : vector<64x128xf32>
    %27 = tpu.matmul %25, %26, %cst_22 {dimension_numbers = #tpu.dot_dimension_numbers<[1], [0], [0], [1], [0, 0, 1, 1], [], []>} : vector<64x128xbf16>, vector<128x128xbf16>, vector<64x128xf32> -> vector<64x128xf32>
    %c0_23 = arith.constant 0 : index
    %c0_24 = arith.constant 0 : index
    %28 = vector.load %arg10[%c0_23, %c0_24] : memref<4x128xbf16, #tpu.memory_space<vmem>>, vector<4x128xbf16>
    %cst_25 = arith.constant dense<0.000000e+00> : vector<64x128xf32>
    %29 = tpu.matmul %0, %28, %cst_25 {dimension_numbers = #tpu.dot_dimension_numbers<[1], [0], [0], [1], [0, 0, 1, 1], [], []>} : vector<64x4xbf16>, vector<4x128xbf16>, vector<64x128xf32> -> vector<64x128xf32>
    %30 = arith.addf %27, %29 : vector<64x128xf32>
    %c0_26 = arith.constant 0 : index
    %c0_27 = arith.constant 0 : index
    %31 = vector.load %arg11[%c0_26, %c0_27] : memref<1x128xf32, #tpu.memory_space<vmem>>, vector<1x128xf32>
    %32 = vector.broadcast %31 : vector<1x128xf32> to vector<64x128xf32>
    %33 = arith.addf %30, %32 : vector<64x128xf32>
    %cst_28 = arith.constant 0.000000e+00 : f32
    %34 = vector.broadcast %cst_28 : f32 to vector<64x128xf32>
    %35 = arith.maximumf %33, %34 : vector<64x128xf32>
    %36 = arith.truncf %35 : vector<64x128xf32> to vector<64x128xbf16>
    %c0_29 = arith.constant 0 : index
    %c0_30 = arith.constant 0 : index
    %37 = vector.load %arg12[%c0_29, %c0_30] : memref<128x128xbf16, #tpu.memory_space<vmem>>, vector<128x128xbf16>
    %cst_31 = arith.constant dense<0.000000e+00> : vector<64x128xf32>
    %38 = tpu.matmul %36, %37, %cst_31 {dimension_numbers = #tpu.dot_dimension_numbers<[1], [0], [0], [1], [0, 0, 1, 1], [], []>} : vector<64x128xbf16>, vector<128x128xbf16>, vector<64x128xf32> -> vector<64x128xf32>
    %c0_32 = arith.constant 0 : index
    %c0_33 = arith.constant 0 : index
    %39 = vector.load %arg13[%c0_32, %c0_33] : memref<1x128xf32, #tpu.memory_space<vmem>>, vector<1x128xf32>
    %40 = vector.broadcast %39 : vector<1x128xf32> to vector<64x128xf32>
    %41 = arith.addf %38, %40 : vector<64x128xf32>
    %cst_34 = arith.constant 0.000000e+00 : f32
    %42 = vector.broadcast %cst_34 : f32 to vector<64x128xf32>
    %43 = arith.maximumf %41, %42 : vector<64x128xf32>
    %44 = arith.truncf %43 : vector<64x128xf32> to vector<64x128xbf16>
    %c0_35 = arith.constant 0 : index
    %c0_36 = arith.constant 0 : index
    %45 = vector.load %arg14[%c0_35, %c0_36] : memref<128x128xbf16, #tpu.memory_space<vmem>>, vector<128x128xbf16>
    %cst_37 = arith.constant dense<0.000000e+00> : vector<64x128xf32>
    %46 = tpu.matmul %44, %45, %cst_37 {dimension_numbers = #tpu.dot_dimension_numbers<[1], [0], [0], [1], [0, 0, 1, 1], [], []>} : vector<64x128xbf16>, vector<128x128xbf16>, vector<64x128xf32> -> vector<64x128xf32>
    %c0_38 = arith.constant 0 : index
    %c0_39 = arith.constant 0 : index
    %47 = vector.load %arg15[%c0_38, %c0_39] : memref<1x128xf32, #tpu.memory_space<vmem>>, vector<1x128xf32>
    %48 = vector.broadcast %47 : vector<1x128xf32> to vector<64x128xf32>
    %49 = arith.addf %46, %48 : vector<64x128xf32>
    %50 = arith.truncf %49 : vector<64x128xf32> to vector<64x128xbf16>
    %c0_40 = arith.constant 0 : index
    %c0_41 = arith.constant 0 : index
    %51 = vector.load %arg16[%c0_40, %c0_41] : memref<64x128xbf16, #tpu.memory_space<vmem>>, vector<64x128xbf16>
    tpu.vector_store %arg16[%c0_40, %c0_41], %50 {strides = array<i32>} : memref<64x128xbf16, #tpu.memory_space<vmem>>, vector<64x128xbf16>,
    return
  }
  func.func @transform_0(%arg0: i32) -> (i32, i32) {
    %c0_i32 = arith.constant 0 : i32
    %c0_i32_0 = arith.constant 0 : i32
    return %arg0, %c0_i32 : i32, i32
  }
  func.func @transform_1(%arg0: i32) -> (i32, i32) {
    %c0_i32 = arith.constant 0 : i32
    %c0_i32_0 = arith.constant 0 : i32
    return %arg0, %c0_i32 : i32, i32
  }
  func.func @transform_2(%arg0: i32) -> (i32, i32) {
    %c0_i32 = arith.constant 0 : i32
    %c0_i32_0 = arith.constant 0 : i32
    %c0_i32_1 = arith.constant 0 : i32
    return %c0_i32, %c0_i32_0 : i32, i32
  }
  func.func @transform_3(%arg0: i32) -> (i32, i32) {
    %c0_i32 = arith.constant 0 : i32
    %c0_i32_0 = arith.constant 0 : i32
    %c0_i32_1 = arith.constant 0 : i32
    return %c0_i32, %c0_i32_0 : i32, i32
  }
  func.func @transform_4(%arg0: i32) -> (i32, i32) {
    %c0_i32 = arith.constant 0 : i32
    %c0_i32_0 = arith.constant 0 : i32
    %c0_i32_1 = arith.constant 0 : i32
    return %c0_i32, %c0_i32_0 : i32, i32
  }
  func.func @transform_5(%arg0: i32) -> (i32, i32) {
    %c0_i32 = arith.constant 0 : i32
    %c0_i32_0 = arith.constant 0 : i32
    %c0_i32_1 = arith.constant 0 : i32
    return %c0_i32, %c0_i32_0 : i32, i32
  }
  func.func @transform_6(%arg0: i32) -> (i32, i32) {
    %c0_i32 = arith.constant 0 : i32
    %c0_i32_0 = arith.constant 0 : i32
    %c0_i32_1 = arith.constant 0 : i32
    return %c0_i32, %c0_i32_0 : i32, i32
  }
  func.func @transform_7(%arg0: i32) -> (i32, i32) {
    %c0_i32 = arith.constant 0 : i32
    %c0_i32_0 = arith.constant 0 : i32
    %c0_i32_1 = arith.constant 0 : i32
    return %c0_i32, %c0_i32_0 : i32, i32
  }
  func.func @transform_8(%arg0: i32) -> (i32, i32) {
    %c0_i32 = arith.constant 0 : i32
    %c0_i32_0 = arith.constant 0 : i32
    %c0_i32_1 = arith.constant 0 : i32
    return %c0_i32, %c0_i32_0 : i32, i32
  }
  func.func @transform_9(%arg0: i32) -> (i32, i32) {
    %c0_i32 = arith.constant 0 : i32
    %c0_i32_0 = arith.constant 0 : i32
    %c0_i32_1 = arith.constant 0 : i32
    return %c0_i32, %c0_i32_0 : i32, i32
  }
  func.func @transform_10(%arg0: i32) -> (i32, i32) {
    %c0_i32 = arith.constant 0 : i32
    %c0_i32_0 = arith.constant 0 : i32
    %c0_i32_1 = arith.constant 0 : i32
    return %c0_i32, %c0_i32_0 : i32, i32
  }
  func.func @transform_11(%arg0: i32) -> (i32, i32) {
    %c0_i32 = arith.constant 0 : i32
    %c0_i32_0 = arith.constant 0 : i32
    %c0_i32_1 = arith.constant 0 : i32
    return %c0_i32, %c0_i32_0 : i32, i32
  }
  func.func @transform_12(%arg0: i32) -> (i32, i32) {
    %c0_i32 = arith.constant 0 : i32
    %c0_i32_0 = arith.constant 0 : i32
    %c0_i32_1 = arith.constant 0 : i32
    return %c0_i32, %c0_i32_0 : i32, i32
  }
  func.func @transform_13(%arg0: i32) -> (i32, i32) {
    %c0_i32 = arith.constant 0 : i32
    %c0_i32_0 = arith.constant 0 : i32
    %c0_i32_1 = arith.constant 0 : i32
    return %c0_i32, %c0_i32_0 : i32, i32
  }
  func.func @transform_14(%arg0: i32) -> (i32, i32) {
    %c0_i32 = arith.constant 0 : i32
    %c0_i32_0 = arith.constant 0 : i32
    %c0_i32_1 = arith.constant 0 : i32
    return %c0_i32, %c0_i32_0 : i32, i32
  }
  func.func @transform_15(%arg0: i32) -> (i32, i32) {
    %c0_i32 = arith.constant 0 : i32
    %c0_i32_0 = arith.constant 0 : i32
    return %arg0, %c0_i32 : i32, i32
  }
}

module attributes {stable_mosaic.version = 11 : i64} {
  func.func @kernel(%arg0: i32, %arg1: memref<64x20xbf16, #tpu.memory_space<vmem>>, %arg2: memref<64x4xbf16, #tpu.memory_space<vmem>>, %arg3: memref<20x128xbf16, #tpu.memory_space<vmem>>, %arg4: memref<1x128xf32, #tpu.memory_space<vmem>>, %arg5: memref<128x128xbf16, #tpu.memory_space<vmem>>, %arg6: memref<1x128xf32, #tpu.memory_space<vmem>>, %arg7: memref<128x128xbf16, #tpu.memory_space<vmem>>, %arg8: memref<1x128xf32, #tpu.memory_space<vmem>>, %arg9: memref<128x128xbf16, #tpu.memory_space<vmem>>, %arg10: memref<4x128xbf16, #tpu.memory_space<vmem>>, %arg11: memref<1x128xf32, #tpu.memory_space<vmem>>, %arg12: memref<128x128xbf16, #tpu.memory_space<vmem>>, %arg13: memref<1x128xf32, #tpu.memory_space<vmem>>, %arg14: memref<128x128xbf16, #tpu.memory_space<vmem>>, %arg15: memref<1x128xf32, #tpu.memory_space<vmem>>, %arg16: memref<64x128xbf16, #tpu.memory_space<vmem>>) attributes {dimension_semantics = [#tpu.dimension_semantics<parallel>], iteration_bounds = array<i64: 4>, scalar_prefetch = 0 : i64, scratch_operands = 0 : i64, tpu.core_type = #tpu.core_type<tc>, window_params = [{transform_indices = @transform_0, window_bounds = array<i64: 64, 20>}, {transform_indices = @transform_1, window_bounds = array<i64: 64, 4>}, {pipeline_mode = #tpu.pipeline_mode<synchronous>, transform_indices = @transform_2, window_bounds = array<i64: 20, 128>}, {pipeline_mode = #tpu.pipeline_mode<synchronous>, transform_indices = @transform_3, window_bounds = array<i64: 1, 128>}, {pipeline_mode = #tpu.pipeline_mode<synchronous>, transform_indices = @transform_4, window_bounds = array<i64: 128, 128>}, {pipeline_mode = #tpu.pipeline_mode<synchronous>, transform_indices = @transform_5, window_bounds = array<i64: 1, 128>}, {pipeline_mode = #tpu.pipeline_mode<synchronous>, transform_indices = @transform_6, window_bounds = array<i64: 128, 128>}, {pipeline_mode = #tpu.pipeline_mode<synchronous>, transform_indices = @transform_7, window_bounds = array<i64: 1, 128>}, {pipeline_mode = #tpu.pipeline_mode<synchronous>, transform_indices = @transform_8, window_bounds = array<i64: 128, 128>}, {pipeline_mode = #tpu.pipeline_mode<synchronous>, transform_indices = @transform_9, window_bounds = array<i64: 4, 128>}, {pipeline_mode = #tpu.pipeline_mode<synchronous>, transform_indices = @transform_10, window_bounds = array<i64: 1, 128>}, {pipeline_mode = #tpu.pipeline_mode<synchronous>, transform_indices = @transform_11, window_bounds = array<i64: 128, 128>}, {pipeline_mode = #tpu.pipeline_mode<synchronous>, transform_indices = @transform_12, window_bounds = array<i64: 1, 128>}, {pipeline_mode = #tpu.pipeline_mode<synchronous>, transform_indices = @transform_13, window_bounds = array<i64: 128, 128>}, {pipeline_mode = #tpu.pipeline_mode<synchronous>, transform_indices = @transform_14, window_bounds = array<i64: 1, 128>}, {transform_indices = @transform_15, window_bounds = array<i64: 64, 128>}]} {
    %c0 = arith.constant 0 : index
    %c0_0 = arith.constant 0 : index
    %0 = vector.load %arg2[%c0, %c0_0] : memref<64x4xbf16, #tpu.memory_space<vmem>>, vector<64x4xbf16>
    %c0_1 = arith.constant 0 : index
    %c0_2 = arith.constant 0 : index
    %1 = vector.load %arg1[%c0_1, %c0_2] : memref<64x20xbf16, #tpu.memory_space<vmem>>, vector<64x20xbf16>
    %c0_3 = arith.constant 0 : index
    %c0_4 = arith.constant 0 : index
    %2 = vector.load %arg3[%c0_3, %c0_4] : memref<20x128xbf16, #tpu.memory_space<vmem>>, vector<20x128xbf16>
    %cst = arith.constant dense<0.000000e+00> : vector<64x128xf32>
    %3 = tpu.matmul %1, %2, %cst {dimension_numbers = #tpu.dot_dimension_numbers<[1], [0], [0], [1], [0, 0, 1, 1], [], []>} : vector<64x20xbf16>, vector<20x128xbf16>, vector<64x128xf32> -> vector<64x128xf32>
    %c0_5 = arith.constant 0 : index
    %c0_6 = arith.constant 0 : index
    %4 = vector.load %arg4[%c0_5, %c0_6] : memref<1x128xf32, #tpu.memory_space<vmem>>, vector<1x128xf32>
    %5 = vector.broadcast %4 : vector<1x128xf32> to vector<64x128xf32>
    %6 = arith.addf %3, %5 : vector<64x128xf32>
    %cst_7 = arith.constant 0.000000e+00 : f32
    %7 = vector.broadcast %cst_7 : f32 to vector<64x128xf32>
    %8 = arith.maximumf %6, %7 : vector<64x128xf32>
    %9 = arith.truncf %8 : vector<64x128xf32> to vector<64x128xbf16>
    %c0_8 = arith.constant 0 : index
    %c0_9 = arith.constant 0 : index
    %10 = vector.load %arg5[%c0_8, %c0_9] : memref<128x128xbf16, #tpu.memory_space<vmem>>, vector<128x128xbf16>
    %cst_10 = arith.constant dense<0.000000e+00> : vector<64x128xf32>
    %11 = tpu.matmul %9, %10, %cst_10 {dimension_numbers = #tpu.dot_dimension_numbers<[1], [0], [0], [1], [0, 0, 1, 1], [], []>} : vector<64x128xbf16>, vector<128x128xbf16>, vector<64x128xf32> -> vector<64x128xf32>
    %c0_11 = arith.constant 0 : index
    %c0_12 = arith.constant 0 : index
    %12 = vector.load %arg6[%c0_11, %c0_12] : memref<1x128xf32, #tpu.memory_space<vmem>>, vector<1x128xf32>
    %13 = vector.broadcast %12 : vector<1x128xf32> to vector<64x128xf32>
    %14 = arith.addf %11, %13 : vector<64x128xf32>
    %cst_13 = arith.constant 0.000000e+00 : f32
    %15 = vector.broadcast %cst_13 : f32 to vector<64x128xf32>
    %16 = arith.maximumf %14, %15 : vector<64x128xf32>
    %17 = arith.truncf %16 : vector<64x128xf32> to vector<64x128xbf16>
    %c0_14 = arith.constant 0 : index
    %c0_15 = arith.constant 0 : index
    %18 = vector.load %arg7[%c0_14, %c0_15] : memref<128x128xbf16, #tpu.memory_space<vmem>>, vector<128x128xbf16>
    %cst_16 = arith.constant dense<0.000000e+00> : vector<64x128xf32>
    %19 = tpu.matmul %17, %18, %cst_16 {dimension_numbers = #tpu.dot_dimension_numbers<[1], [0], [0], [1], [0, 0, 1, 1], [], []>} : vector<64x128xbf16>, vector<128x128xbf16>, vector<64x128xf32> -> vector<64x128xf32>
    %c0_17 = arith.constant 0 : index
    %c0_18 = arith.constant 0 : index
    %20 = vector.load %arg8[%c0_17, %c0_18] : memref<1x128xf32, #tpu.memory_space<vmem>>, vector<1x128xf32>
    %21 = vector.broadcast %20 : vector<1x128xf32> to vector<64x128xf32>
    %22 = arith.addf %19, %21 : vector<64x128xf32>
    %cst_19 = arith.constant 0.000000e+00 : f32
    %23 = vector.broadcast %cst_19 : f32 to vector<64x128xf32>
    %24 = arith.maximumf %22, %23 : vector<64x128xf32>
    %25 = arith.truncf %24 : vector<64x128xf32> to vector<64x128xbf16>
    %c0_20 = arith.constant 0 : index
    %c0_21 = arith.constant 0 : index
    %26 = vector.load %arg9[%c0_20, %c0_21] : memref<128x128xbf16, #tpu.memory_space<vmem>>, vector<128x128xbf16>
    %cst_22 = arith.constant dense<0.000000e+00> : vector<64x128xf32>
    %27 = tpu.matmul %25, %26, %cst_22 {dimension_numbers = #tpu.dot_dimension_numbers<[1], [0], [0], [1], [0, 0, 1, 1], [], []>} : vector<64x128xbf16>, vector<128x128xbf16>, vector<64x128xf32> -> vector<64x128xf32>
    %c0_23 = arith.constant 0 : index
    %c0_24 = arith.constant 0 : index
    %28 = vector.load %arg10[%c0_23, %c0_24] : memref<4x128xbf16, #tpu.memory_space<vmem>>, vector<4x128xbf16>
    %cst_25 = arith.constant dense<0.000000e+00> : vector<64x128xf32>
    %29 = tpu.matmul %0, %28, %cst_25 {dimension_numbers = #tpu.dot_dimension_numbers<[1], [0], [0], [1], [0, 0, 1, 1], [], []>} : vector<64x4xbf16>, vector<4x128xbf16>, vector<64x128xf32> -> vector<64x128xf32>
    %30 = arith.addf %27, %29 : vector<64x128xf32>
    %c0_26 = arith.constant 0 : index
    %c0_27 = arith.constant 0 : index
    %31 = vector.load %arg11[%c0_26, %c0_27] : memref<1x128xf32, #tpu.memory_space<vmem>>, vector<1x128xf32>
    %32 = vector.broadcast %31 : vector<1x128xf32> to vector<64x128xf32>
    %33 = arith.addf %30, %32 : vector<64x128xf32>
    %cst_28 = arith.constant 0.000000e+00 : f32
    %34 = vector.broadcast %cst_28 : f32 to vector<64x128xf32>
    %35 = arith.maximumf %33, %34 : vector<64x128xf32>
    %36 = arith.truncf %35 : vector<64x128xf32> to vector<64x128xbf16>
    %c0_29 = arith.constant 0 : index
    %c0_30 = arith.constant 0 : index
    %37 = vector.load %arg12[%c0_29, %c0_30] : memref<128x128xbf16, #tpu.memory_space<vmem>>, vector<128x128xbf16>
    %cst_31 = arith.constant dense<0.000000e+00> : vector<64x128xf32>
    %38 = tpu.matmul %36, %37, %cst_31 {dimension_numbers = #tpu.dot_dimension_numbers<[1], [0], [0], [1], [0, 0, 1, 1], [], []>} : vector<64x128xbf16>, vector<128x128xbf16>, vector<64x128xf32> -> vector<64x128xf32>
    %c0_32 = arith.constant 0 : index
    %c0_33 = arith.constant 0 : index
    %39 = vector.load %arg13[%c0_32, %c0_33] : memref<1x128xf32, #tpu.memory_space<vmem>>, vector<1x128xf32>
    %40 = vector.broadcast %39 : vector<1x128xf32> to vector<64x128xf32>
    %41 = arith.addf %38, %40 : vector<64x128xf32>
    %cst_34 = arith.constant 0.000000e+00 : f32
    %42 = vector.broadcast %cst_34 : f32 to vector<64x128xf32>
    %43 = arith.maximumf %41, %42 : vector<64x128xf32>
    %44 = arith.truncf %43 : vector<64x128xf32> to vector<64x128xbf16>
    %c0_35 = arith.constant 0 : index
    %c0_36 = arith.constant 0 : index
    %45 = vector.load %arg14[%c0_35, %c0_36] : memref<128x128xbf16, #tpu.memory_space<vmem>>, vector<128x128xbf16>
    %cst_37 = arith.constant dense<0.000000e+00> : vector<64x128xf32>
    %46 = tpu.matmul %44, %45, %cst_37 {dimension_numbers = #tpu.dot_dimension_numbers<[1], [0], [0], [1], [0, 0, 1, 1], [], []>} : vector<64x128xbf16>, vector<128x128xbf16>, vector<64x128xf32> -> vector<64x128xf32>
    %c0_38 = arith.constant 0 : index
    %c0_39 = arith.constant 0 : index
    %47 = vector.load %arg15[%c0_38, %c0_39] : memref<1x128xf32, #tpu.memory_space<vmem>>, vector<1x128xf32>
    %48 = vector.broadcast %47 : vector<1x128xf32> to vector<64x128xf32>
    %49 = arith.addf %46, %48 : vector<64x128xf32>
    %50 = arith.truncf %49 : vector<64x128xf32> to vector<64x128xbf16>
    %c0_40 = arith.constant 0 : index
    %c0_41 = arith.constant 0 : index
    %51 = vector.load %arg16[%c0_40, %c0_41] : memref<64x128xbf16, #tpu.memory_space<vmem>>, vector<64x128xbf16>
    tpu.vector_store %arg16[%c0_40, %c0_41], %50 {strides = array<i32>} : memref<64x128xbf16, #tpu.memory_space<vmem>>, vector<64x128xbf16>,
    return
  }
  func.func @transform_0(%arg0: i32) -> (i32, i32) {
    %c0_i32 = arith.constant 0 : i32
    %c0_i32_0 = arith.constant 0 : i32
    return %arg0, %c0_i32 : i32, i32
  }
  func.func @transform_1(%arg0: i32) -> (i32, i32) {
    %c0_i32 = arith.constant 0 : i32
    %c0_i32_0 = arith.constant 0 : i32
    return %arg0, %c0_i32 : i32, i32
  }
  func.func @transform_2(%arg0: i32) -> (i32, i32) {
    %c0_i32 = arith.constant 0 : i32
    %c0_i32_0 = arith.constant 0 : i32
    %c0_i32_1 = arith.constant 0 : i32
    return %c0_i32, %c0_i32_0 : i32, i32
  }
  func.func @transform_3(%arg0: i32) -> (i32, i32) {
    %c0_i32 = arith.constant 0 : i32
    %c0_i32_0 = arith.constant 0 : i32
    %c0_i32_1 = arith.constant 0 : i32
    return %c0_i32, %c0_i32_0 : i32, i32
  }
  func.func @transform_4(%arg0: i32) -> (i32, i32) {
    %c0_i32 = arith.constant 0 : i32
    %c0_i32_0 = arith.constant 0 : i32
    %c0_i32_1 = arith.constant 0 : i32
    return %c0_i32, %c0_i32_0 : i32, i32
  }
  func.func @transform_5(%arg0: i32) -> (i32, i32) {
    %c0_i32 = arith.constant 0 : i32
    %c0_i32_0 = arith.constant 0 : i32
    %c0_i32_1 = arith.constant 0 : i32
    return %c0_i32, %c0_i32_0 : i32, i32
  }
  func.func @transform_6(%arg0: i32) -> (i32, i32) {
    %c0_i32 = arith.constant 0 : i32
    %c0_i32_0 = arith.constant 0 : i32
    %c0_i32_1 = arith.constant 0 : i32
    return %c0_i32, %c0_i32_0 : i32, i32
  }
  func.func @transform_7(%arg0: i32) -> (i32, i32) {
    %c0_i32 = arith.constant 0 : i32
    %c0_i32_0 = arith.constant 0 : i32
    %c0_i32_1 = arith.constant 0 : i32
    return %c0_i32, %c0_i32_0 : i32, i32
  }
  func.func @transform_8(%arg0: i32) -> (i32, i32) {
    %c0_i32 = arith.constant 0 : i32
    %c0_i32_0 = arith.constant 0 : i32
    %c0_i32_1 = arith.constant 0 : i32
    return %c0_i32, %c0_i32_0 : i32, i32
  }
  func.func @transform_9(%arg0: i32) -> (i32, i32) {
    %c0_i32 = arith.constant 0 : i32
    %c0_i32_0 = arith.constant 0 : i32
    %c0_i32_1 = arith.constant 0 : i32
    return %c0_i32, %c0_i32_0 : i32, i32
  }
  func.func @transform_10(%arg0: i32) -> (i32, i32) {
    %c0_i32 = arith.constant 0 : i32
    %c0_i32_0 = arith.constant 0 : i32
    %c0_i32_1 = arith.constant 0 : i32
    return %c0_i32, %c0_i32_0 : i32, i32
  }
  func.func @transform_11(%arg0: i32) -> (i32, i32) {
    %c0_i32 = arith.constant 0 : i32
    %c0_i32_0 = arith.constant 0 : i32
    %c0_i32_1 = arith.constant 0 : i32
    return %c0_i32, %c0_i32_0 : i32, i32
  }
  func.func @transform_12(%arg0: i32) -> (i32, i32) {
    %c0_i32 = arith.constant 0 : i32
    %c0_i32_0 = arith.constant 0 : i32
    %c0_i32_1 = arith.constant 0 : i32
    return %c0_i32, %c0_i32_0 : i32, i32
  }
  func.func @transform_13(%arg0: i32) -> (i32, i32) {
    %c0_i32 = arith.constant 0 : i32
    %c0_i32_0 = arith.constant 0 : i32
    %c0_i32_1 = arith.constant 0 : i32
    return %c0_i32, %c0_i32_0 : i32, i32
  }
  func.func @transform_14(%arg0: i32) -> (i32, i32) {
    %c0_i32 = arith.constant 0 : i32
    %c0_i32_0 = arith.constant 0 : i32
    %c0_i32_1 = arith.constant 0 : i32
    return %c0_i32, %c0_i32_0 : i32, i32
  }
  func.func @transform_15(%arg0: i32) -> (i32, i32) {
    %c0_i32 = arith.constant 0 : i32
    %c0_i32_0 = arith.constant 0 : i32
    return %arg0, %c0_i32 : i32, i32
  }
}

</mosaic_0001>

<bundles_post_ra>
// kernel: tpu_custom_call.1
= control target key start
LH: loop header
LB: loop body
LE: loop exit
PB: predicated region body
PF: predicated region fallthrough
CT: control target
= control target key end

     0   :  { %s2548_s0 = inlined_call_operand.vmem [shape: bf16[256,20], index: 0, kind: input, shape index: {}]   ;;  %s2549_s1 = inlined_call_operand.vmem [shape: bf16[256,4], index: 1, kind: input, shape index: {}]   ;;  %s2550_s2 = inlined_call_operand.vmem [shape: bf16[20,128], index: 2, kind: input, shape index: {}]   ;;  %s2551_s3 = inlined_call_operand.vmem [shape: f32[1,128], index: 3, kind: input, shape index: {}]   ;;  %s2552_s4 = inlined_call_operand.vmem [shape: bf16[128,128], index: 4, kind: input, shape index: {}]   ;;  %s2553_s5 = inlined_call_operand.vmem [shape: f32[1,128], index: 5, kind: input, shape index: {}]   ;;  %s2554_s6 = inlined_call_operand.vmem [shape: bf16[128,128], index: 6, kind: input, shape index: {}]   ;;  %s2555_s7 = inlined_call_operand.vmem [shape: f32[1,128], index: 7, kind: input, shape index: {}]   ;;  %s2556_s8 = inlined_call_operand.vmem [shape: bf16[128,128], index: 8, kind: input, shape index: {}]   ;;  %s2557_s9 = inlined_call_operand.vmem [shape: bf16[4,128], index: 9, kind: input, shape index: {}]   ;;  %s2558_s10 = inlined_call_operand.vmem [shape: f32[1,128], index: 10, kind: input, shape index: {}]   ;;  %s2559_s11 = inlined_call_operand.vmem [shape: bf16[128,128], index: 11, kind: input, shape index: {}]   ;;  %s2560_s12 = inlined_call_operand.vmem [shape: f32[1,128], index: 12, kind: input, shape index: {}]   ;;  %s2561_s13 = inlined_call_operand.hbm [shape: bf16[128,128], index: 13, kind: input, shape index: {}]   ;;  %s2562_s14 = inlined_call_operand.vmem [shape: f32[1,128], index: 14, kind: input, shape index: {}]   ;;  %s2563_s15 = inlined_call_operand.hbm [shape: bf16[256,128], index: 15, kind: output, shape index: {}]  }
   0x1   :  { %2565 = sst [smem:[#allocation10_spill]] %s2548_s0 }
   0x2   :  { %2566 = sst [smem:[#allocation11_spill]] %s2549_s1 }
   0x3   :  { %2567 = sst [smem:[#allocation12_spill]] %s2561_s13 }
   0x4   :  { %20 = vsyncpa [#allocation3], 0 }
   0x5   :  { %21 = vsyncpa [#allocation4], 0 }
   0x6   :  { %23 = vsyncpa [#allocation4 + $0x1], 0  ;;  %s2278_s18 = smov 0   ;;  %s2280_s19 = smov 0  }
   0x7   :  { %s2282_s20 = smov 0   ;;  %s2284_s21 = smov 0  }
   0x8 LB: > { %2568 = sst [smem:[#allocation8_spill]] %s2186_s20  ;;  %s2299_s22 = sadd.s32 4294967295, %s2190_s21   ;;  %s2190_s21 = sphi %s2284_s21, %s2581_s21   ;;  %s2186_s20 = sphi %s2282_s20, %s2578_s20   ;;  %s2182_s19 = sphi %s2280_s19, %s2580_s19   ;;  %s2178_s18 = sphi %s2278_s18, %s2579_s18  }
   0x9   : > { %s1661_s23 = sadd.s32 4294967294, %s2190_s21   ;;  %s2303_s24 = sadd.s32 1, %s2190_s21  }
   0xa   : > { %s361_s25 = sadd.s32 1, %s2186_s20  ;;  %s358_s26 = ssub.s32 %s2190_s21, %s2303_s24 }
   0xb   : > { %p371_p0 = scmp.ne.s32.totalorder %s2186_s20, %s2182_s19  ;;  %p359_p1 = scmp.eq.s32.totalorder %s358_s26, 0 }
   0xc   : > { %p372_p2 = scmp.eq.s32.totalorder %s2299_s22, 3  ;;  %p377_p3 = scmp.ne.s32.totalorder %s2182_s19, %s2178_s18 }
   0xd   : > { %p378_p4 = scmp.eq.s32.totalorder %s1661_s23, 3  ;;  %p1662_p7 = scmp.ge.s32.totalorder %s2190_s21, 1 }
   0xe   : > { %s2314_s27 = scalar_select %p359_p1, %s2186_s20, %s361_s25  }
   0xf   : > { %p2316_p5 = por %p372_p2, %p371_p0  ;;  %p2320_p6 = por %p378_p4, %p377_p3 }
  0x10   : > { %2569 = sst [smem:[#allocation9_spill]] %s2314_s27  ;;  %p385_p8 = scmp.lt.s32.totalorder %s2190_s21, 5 }
  0x11   : > { %s2571_s29 = scalar_select %p2320_p6, 1, 0 }
  0x12   : > { %p2010_p9 = scmp.eq.s32.totalorder %s2299_s22, 0  ;;  %p2327_p10 = pnand %p1662_p7, %p385_p8 }
  0x13   : > { %s2192_s16 = smov [#allocation2]  }
  0x14   : > { %s430_s17 = sshll.u32 %s2192_s16, 4  ;;  %p2002_p11 = pneg %p2327_p10  ;;  %s431_s17 = int_to_ptr.vmem [resolvable:$true] %s430_s17 }
  0x15   : > { %s2111_s23 = scalar_lea.vmem %s431_s17, 1024  ;;  %p2119_p3 = scmp.lt.s32.totalorder %s431_s17, %s431_s17 }
  0x16   : > { %p2003_p12 = pnand %p2010_p9, %p2002_p11  ;;  %p2112_p0 = scmp.ne.s32.totalorder %s431_s17, %s2111_s23 }
  0x17   : > { %p2120_p4 = scmp.lt.s32.totalorder %s2111_s23, %s2111_s23 }
  0x18   : > { %p2102_p13 = pneg %p2003_p12 }
  0x19   : > { %p2121_p6 = por %p2120_p4, %p2119_p3 }
  0x1a   : > { %p2114_p1 = pnand %p2112_p0, %p2102_p13 }
  0x1c   : > { %p2115_p2 = pneg %p2114_p1 }
  0x1e   : > { %p2122_p7 = pnand %p2121_p6, %p2115_p2 }
  0x20   : > { %2125 = shalt.err (!%p2122_p7)
}
  0x21   : > { %s2193_s25 = smov 64   ;;  %s2194_s26 = smov 4  }
  0x22   : > { %s2573_s13 = sld [smem:[#allocation12_spill]] }
  0x24   : > { %467 = sbr.rel (%p2327_p10) target bundleno = 1309 (0x51d), region = 80 }
  0x28   : > { %2005 = dma.hbm_to_vmem [thread:$0]  (!%p2003_p12), %s2573_s13, 1024, %s431_s17, [#allocation3], %s2193_s25, %s2193_s25, %s2194_s26  }
  0x29   : > { %2169 = dma.done.wait (%p2010_p9), [#allocation3], 1024  }
  0x2a   : > { %2171 = vsyncadd (%p2010_p9), [#allocation3], 4294966272  ;;  %s1668_s16 = sshll.u32 %s2299_s22, 3  ;;  %vm602_vm0 = vcmask 1041408   ;;  %s2574_s0 = sld [smem:[#allocation10_spill]]  ;;  %vm589_vm1 = vcmask 162816  }
  0x2b   : > { %p521_p8 = scmp.lt.s32.totalorder %s1668_s16, 31  ;;  %v2050_v0 = vld [vmem:[%s2550_s2 + $0x8] ss:$0 sps:$4 sm:$0x33]   ;;  %v2051_v1 = vld [vmem:[%s2550_s2] sm:$0xff]   ;;  %v2056_v5 = vld [vmem:[%s2552_s4 + $0x38] sm:$0xff]  }
  0x2c   : > { %1994 = vmatprep.subr.msk.bf16.mxu1 %vm602_vm0, %v2050_v0  ;;  %v604_v2 = vsel %vm602_vm0, %v2050_v0, 0  ;;  %v2057_v7 = vld [vmem:[%s2552_s4 + $0x30] sm:$0xff]   ;;  %v2058_v8 = vld [vmem:[%s2552_s4 + $0x28] sm:$0xff]   ;;  %v2059_v10 = vld [vmem:[%s2552_s4 + $0x20] sm:$0xff]   ;;  %s2575_s1 = sld [smem:[#allocation11_spill]]  ;;  %vm1016_vm2 = vcmask 31744  }
  0x2d   : > { %s2583_s16 = smov (!%p521_p8, %s1668_s16), 31  ;;  %1853 = vmatpush3.bf16.msra.mxu1 %v604_v2  ;;  %v2060_v11 = vld [vmem:[%s2552_s4 + $0x18] sm:$0xff]   ;;  %v2061_v12 = vld [vmem:[%s2552_s4 + $0x10] sm:$0xff]   ;;  %v2062_v13 = vld [vmem:[%s2552_s4 + $0x8] sm:$0xff]   ;;  %s2195_s13 = smov [#allocation5]  }
  0x2e   : > { %s1669_s23 = sshll.u32 %s2583_s16, 2  ;;  %1854 = vmatprep.subr.bf16.mxu1 %v2051_v1  ;;  %v2063_v14 = vld [vmem:[%s2552_s4] sm:$0xff]   ;;  %v2064_v15 = vld [vmem:[%s2554_s6 + $0x38] sm:$0xff]   ;;  %v2065_v16 = vld [vmem:[%s2554_s6 + $0x30] sm:$0xff]  }
  0x2f   : > { %1888 = vmatprep.subr.bf16.mxu0 %v2064_v15  ;;  %v2066_v17 = vld [vmem:[%s2554_s6 + $0x28] sm:$0xff]   ;;  %v2067_v18 = vld [vmem:[%s2554_s6 + $0x20] sm:$0xff]   ;;  %v2068_v19 = vld [vmem:[%s2554_s6 + $0x18] sm:$0xff]  }
  0x30   : > { %s524_s30 = scalar_lea.vmem %s2574_s0, %s1669_s23  ;;  %1889 = vmatpush3.bf16.msra.mxu0 %v2064_v15  ;;  %v1672_v22 = vld [vmem:[%s2551_s3] ss:$0 sm:$0xff]  ;;  %v2069_v49 = vld [vmem:[%s2554_s6 + $0x10] sm:$0xff]   ;;  %v2070_v50 = vld [vmem:[%s2554_s6 + $0x8] sm:$0xff]   ;;  %s517_s0 = sand.u32 1, %s2182_s19  }
  0x31   : > { %v2052_v3 = vld [vmem:[%s524_s30] sm:$0xff]   ;;  %v2053_v4 = vld [vmem:[%s524_s30 + $0x8] sm:$0xff]   ;;  %1855 = vmatpush3.bf16.msra.mxu1 %v2051_v1  ;;  %v2054_v6 = vld [vmem:[%s524_s30 + $0x10] sm:$0xff]   ;;  %1890 = vmatprep.subr.bf16.mxu0 %v2065_v16  ;;  %s1667_s16 = sshll.u32 %s517_s0, 5  ;;  %s2508_s27 = scalar_lea.sflag [#allocation4], %s517_s0 }
  0x32   : > { %1856 = vmatprep.mubr.msk.bf16.mxu1 %vm589_vm1, %v2052_v3  ;;  %1864 = vmatprep.subr.bf16.mxu1 %v2056_v5  ;;  %v2055_v9 = vld [vmem:[%s524_s30 + $0x18] sm:$0xff]   ;;  %s2385_s30 = scalar_lea.vmem %s2575_s1, %s1669_s23  ;;  %v2071_v51 = vld [vmem:[%s2554_s6] sm:$0xff]   ;;  %s1757_s23 = sshll.u32 %s2299_s22, 9 }
  0x33   : > { %v2072_v52 = vld [vmem:[%s2556_s8 + $0x38] sm:$0xff]   ;;  %v995_v53 = vld [vmem:[%s2557_s9] sm:$0x3]  ;;  %s2504_s20 = scalar_lea.hbm %s2563_s15, %s1757_s23 }
  0x34   : > { %1857 = vmatmul.mubr.msk.bf16.vlgmr.msra.gmra.mxu1 %vm589_vm1, %v2053_v4  ;;  %1891 = vmatpush3.bf16.msra.mxu0 %v2065_v16  ;;  %v1030_v54 = vsel %vm602_vm0, %v995_v53, 0  ;;  %v1683_v57 = vld [vmem:[%s2553_s5] ss:$0 sm:$0xff]  ;;  %v2074_v16 = vld [vmem:[%s2556_s8 + $0x28] sm:$0xff]  }
  0x35   : > { %1860 = vmatprep.mubr.msk.bf16.mxu1 %vm589_vm1, %v2054_v6  ;;  %1865 = vmatpush3.bf16.msra.mxu1 %v2056_v5 }
  0x36   : > { %1866 = vmatprep.subr.bf16.mxu1 %v2057_v7  ;;  %1892 = vmatprep.subr.bf16.mxu0 %v2066_v17 }
  0x38   : > { %1893 = vmatpush3.bf16.msra.mxu0 %v2066_v17 }
  0x39   : > { %1867 = vmatpush3.bf16.msra.mxu1 %v2057_v7  ;;  %1894 = vmatprep.subr.bf16.mxu0 %v2067_v18 }
  0x3a   : > { %1868 = vmatprep.subr.bf16.mxu1 %v2058_v8 }
  0x3c   : > { %1861 = vmatmul.mubr.msk.bf16.gmra.mxu1 %vm589_vm1, %v2055_v9  ;;  %1895 = vmatpush3.bf16.msra.mxu0 %v2067_v18  ;;  %v2073_v9 = vld [vmem:[%s2556_s8 + $0x30] sm:$0xff]  }
  0x3d   : > { %1869 = vmatpush3.bf16.msra.mxu1 %v2058_v8  ;;  %1896 = vmatprep.subr.bf16.mxu0 %v2068_v19 }
  0x3e   : > { %1870 = vmatprep.subr.bf16.mxu1 %v2059_v10 }
  0x40   : > { %1897 = vmatpush3.bf16.msra.mxu0 %v2068_v19 }
  0x41   : > { %1871 = vmatpush3.bf16.msra.mxu1 %v2059_v10  ;;  %1898 = vmatprep.subr.bf16.mxu0 %v2069_v49 }
  0x42   : > { %1872 = vmatprep.subr.bf16.mxu1 %v2060_v11 }
  0x44   : > { %1899 = vmatpush3.bf16.msra.mxu0 %v2069_v49 }
  0x45   : > { %1873 = vmatpush3.bf16.msra.mxu1 %v2060_v11  ;;  %1900 = vmatprep.subr.bf16.mxu0 %v2070_v50 }
  0x46   : > { %1874 = vmatprep.subr.bf16.mxu1 %v2061_v12 }
  0x48   : > { %1901 = vmatpush3.bf16.msra.mxu0 %v2070_v50 }
  0x49   : > { %1875 = vmatpush3.bf16.msra.mxu1 %v2061_v12  ;;  %1902 = vmatprep.subr.bf16.mxu0 %v2071_v51 }
  0x4a   : > { %1876 = vmatprep.subr.bf16.mxu1 %v2062_v13 }
  0x4c   : > { %1903 = vmatpush3.bf16.msra.mxu0 %v2071_v51 }
  0x4d   : > { %1877 = vmatpush3.bf16.msra.mxu1 %v2062_v13  ;;  %1922 = vmatprep.subr.bf16.mxu0 %v2072_v52 }
  0x4e   : > { %1878 = vmatprep.subr.bf16.mxu1 %v2063_v14 }
  0x51   : > { %1879 = vmatpush3.bf16.msra.mxu1 %v2063_v14 }
  0x52   : > { %1995 = vmatprep.subr.msk.bf16.mxu1 %vm602_vm0, %v995_v53 }
  0xf4   : > { %v1858_v20 = vpop.f32.mrf.mxu1 }
  0xf5   : > { %v649_v26 = vadd.f32 %v1858_v20, %v1672_v22 }
  0xf6   : > { %v640_v21 = vpop.f32.mrf.mxu1 }
  0xf7   : > { %v641_v24 = vadd.f32 %v1672_v22, %v640_v21  ;;  %v673_v33 = vmax.f32 %v649_v26, 0.0  ;;  %v2079_v26 = vld [vmem:[%s2385_s30] sm:$0xff]  }
  0xf8   : > { %v1859_v23 = vpop.f32.mrf.mxu1 }
  0xf9   : > { %v652_v25 = vadd.f32 %v1859_v23, %v1672_v22  ;;  %v671_v31 = vmax.f32 %v641_v24, 0.0  ;;  %v2076_v23 = vld [vmem:[%s2556_s8 + $0x18] sm:$0xff]   ;;  %v2077_v24 = vld [vmem:[%s2556_s8 + $0x10] sm:$0xff]  }
  0xfa   : > { %v643_v27 = vpop.f32.mrf.mxu1 }
  0xfb   : > { %v644_v28 = vadd.f32 %v1672_v22, %v643_v27  ;;  %v674_v29 = vmax.f32 %v652_v25, 0.0  ;;  %v2078_v25 = vld [vmem:[%s2556_s8 + $0x8] sm:$0xff]  }
  0xfc   : > { %v1862_v30 = vpop.f32.mrf.mxu1  ;;  %v2080_v27 = vld [vmem:[%s2385_s30 + $0x8] sm:$0xff]  }
  0xfd   : > { %v672_v32 = vmax.f32 %v644_v28, 0.0  ;;  %v680_v36 = vpack.c.bf16 %v674_v29, %v673_v33  ;;  %v665_v40 = vadd.f32 %v1862_v30, %v1672_v22  ;;  %v2081_v28 = vld [vmem:[%s2556_s8] sm:$0xff]   ;;  %v2082_v29 = vld [vmem:[%s2385_s30 + $0x10] sm:$0xff]   ;;  %v2083_v30 = vld [vmem:[%s2385_s30 + $0x18] sm:$0xff]   ;;  %s519_s30 = scalar_lea.vmem [#allocation5], %s1667_s16  ;;  %s2130_s16 = sshll.u32 %s2195_s13, 4  ;;  %s2131_s16 = int_to_ptr.vmem [resolvable:$false] %s2130_s16 }
  0xfe   : > { %v656_v34 = vpop.f32.mrf.mxu1  ;;  %v2086_v33 = vld [vmem:[%s2559_s11 + $0x28] sm:$0xff]   ;;  %s1575_s17 = sshll.u32 %s519_s30, 4  ;;  %s2132_s25 = scalar_lea.vmem %s2131_s16, 1024  ;;  %s2499_s17 = int_to_ptr.vmem [resolvable:$true] %s1575_s17 }
  0xff   : > { %v679_v35 = vpack.c.bf16 %v672_v32, %v671_v31  ;;  %v657_v38 = vadd.f32 %v1672_v22, %v656_v34  ;;  %v677_v46 = vmax.f32 %v665_v40, 0.0  ;;  %v2084_v31 = vld [vmem:[%s2559_s11 + $0x38] sm:$0xff]   ;;  %v2085_v32 = vld [vmem:[%s2559_s11 + $0x30] sm:$0xff]   ;;  %v2087_v34 = vld [vmem:[%s2559_s11 + $0x20] sm:$0xff]   ;;  %s2126_s22 = scalar_lea.vmem %s2499_s17, 512  ;;  %p2133_p11 = scmp.lt.s32.totalorder %s2499_s17, %s2131_s16 }
 0x100   : > { %v1863_v37 = vpop.f32.mrf.mxu1  ;;  %p2127_p6 = scmp.ne.s32.totalorder %s2499_s17, %s2126_s22  ;;  %p2134_p12 = scmp.lt.s32.totalorder %s2132_s25, %s2126_s22 }
 0x101   : > { %v668_v39 = vadd.f32 %v1863_v37, %v1672_v22  ;;  %1880 = vmatprep.mubr.bf16.mxu1 %v679_v35  ;;  %v675_v44 = vmax.f32 %v657_v38, 0.0  ;;  %v1692_v37 = vld [vmem:[%s2555_s7] ss:$0 sm:$0xff] }
 0x102   : > { %v659_v41 = vpop.f32.mrf.mxu1  ;;  %1881 = vmatmul.mubr.bf16.vlgmr.msra.gmra.mxu1 %v680_v36  ;;  %p2128_p9 = pnand %p2127_p6, %p2316_p5  ;;  %p2135_p13 = por %p2134_p12, %p2133_p11 }
 0x103   : > { %v660_v42 = vadd.f32 %v1672_v22, %v659_v41  ;;  %v678_v43 = vmax.f32 %v668_v39, 0.0  ;;  %1913 = vmatpush3.bf16.msra.mxu1 %v1030_v54  ;;  %v2075_v22 = vld [vmem:[%s2556_s8 + $0x20] sm:$0xff]  }
 0x104   : > { %1946 = vmatprep.subr.bf16.mxu1 %v2084_v31  ;;  %p2129_p10 = pneg %p2128_p9 }
 0x105   : > { %v676_v45 = vmax.f32 %v660_v42, 0.0  ;;  %v682_v48 = vpack.c.bf16 %v678_v43, %v677_v46 }
 0x106   : > { %p2136_p0 = pnand %p2135_p13, %p2129_p10 }
 0x107   : > { %v681_v47 = vpack.c.bf16 %v676_v45, %v675_v44 }
 0x109   : > { %1884 = vmatprep.mubr.bf16.mxu1 %v681_v47 }
 0x10a   : > { %1885 = vmatmul.mubr.bf16.gmra.mxu1 %v682_v48 }
 0x10b   : > { %1914 = vmatprep.mubr.msk.bf16.mxu1 %vm1016_vm2, %v2079_v26 }
 0x112   : > { %1915 = vmatmul.mubr.msk.bf16.vlgmr.msra.gmra.mxu1 %vm1016_vm2, %v2080_v27 }
 0x113   : > { %1918 = vmatprep.mubr.msk.bf16.mxu1 %vm1016_vm2, %v2082_v29  ;;  %1947 = vmatpush3.bf16.msra.mxu1 %v2084_v31 }
 0x114   : > { %1948 = vmatprep.subr.bf16.mxu1 %v2085_v32 }
 0x117   : > { %1949 = vmatpush3.bf16.msra.mxu1 %v2085_v32 }
 0x118   : > { %1950 = vmatprep.subr.bf16.mxu1 %v2086_v33 }
 0x11a   : > { %1919 = vmatmul.mubr.msk.bf16.gmra.mxu1 %vm1016_vm2, %v2083_v30 }
 0x11b   : > { %1951 = vmatpush3.bf16.msra.mxu1 %v2086_v33 }
 0x11c   : > { %1952 = vmatprep.subr.bf16.mxu1 %v2087_v34 }
 0x11f   : > { %1953 = vmatpush3.bf16.msra.mxu1 %v2087_v34 }
 0x1c2   : > { %v1882_v55 = vpop.f32.mrf.mxu1 }
 0x1c3   : > { %v797_v61 = vadd.f32 %v1882_v55, %v1683_v57 }
 0x1c4   : > { %v788_v56 = vpop.f32.mrf.mxu1 }
 0x1c5   : > { %v789_v59 = vadd.f32 %v1683_v57, %v788_v56  ;;  %v821_v4 = vmax.f32 %v797_v61, 0.0 }
 0x1c6   : > { %v1883_v58 = vpop.f32.mrf.mxu1 }
 0x1c7   : > { %v800_v60 = vadd.f32 %v1883_v58, %v1683_v57  ;;  %v819_v2 = vmax.f32 %v789_v59, 0.0 }
 0x1c8   : > { %v791_v62 = vpop.f32.mrf.mxu1 }
 0x1c9   : > { %v792_v63 = vadd.f32 %v1683_v57, %v791_v62  ;;  %v822_v0 = vmax.f32 %v800_v60, 0.0 }
 0x1ca   : > { %v1886_v1 = vpop.f32.mrf.mxu1 }
 0x1cb   : > { %v820_v3 = vmax.f32 %v792_v63, 0.0  ;;  %v828_v7 = vpack.c.bf16 %v822_v0, %v821_v4  ;;  %v813_v12 = vadd.f32 %v1886_v1, %v1683_v57  ;;  %v2088_v0 = vld [vmem:[%s2559_s11 + $0x18] sm:$0xff]   ;;  %v2089_v1 = vld [vmem:[%s2559_s11 + $0x10] sm:$0xff]  }
 0x1cc   : > { %v804_v5 = vpop.f32.mrf.mxu1  ;;  %1954 = vmatprep.subr.bf16.mxu1 %v2088_v0  ;;  %v2092_v4 = vld [vmem:[#allocation2 + $0x38] sm:$0xff]  }
 0x1cd   : > { %v827_v6 = vpack.c.bf16 %v820_v3, %v819_v2  ;;  %v805_v10 = vadd.f32 %v1683_v57, %v804_v5  ;;  %v825_v19 = vmax.f32 %v813_v12, 0.0  ;;  %1955 = vmatpush3.bf16.msra.mxu1 %v2088_v0  ;;  %v2090_v2 = vld [vmem:[%s2559_s11 + $0x8] sm:$0xff]   ;;  %v2091_v3 = vld [vmem:[%s2559_s11] sm:$0xff]   ;;  %v2093_v5 = vld [vmem:[#allocation2 + $0x30] sm:$0xff]  }
 0x1ce   : > { %v1887_v8 = vpop.f32.mrf.mxu1  ;;  %1956 = vmatprep.subr.bf16.mxu1 %v2089_v1 }
 0x1cf   : > { %v816_v11 = vadd.f32 %v1887_v8, %v1683_v57  ;;  %1904 = vmatprep.mubr.bf16.mxu0 %v827_v6  ;;  %v823_v17 = vmax.f32 %v805_v10, 0.0  ;;  %v2094_v6 = vld [vmem:[#allocation2 + $0x28] sm:$0xff]   ;;  %v2096_v8 = vld [vmem:[#allocation2 + $0x18] sm:$0xff]  }
 0x1d0   : > { %v807_v13 = vpop.f32.mrf.mxu1  ;;  %1905 = vmatmul.mubr.bf16.vlgmr.msra.gmra.mxu0 %v828_v7  ;;  %v2095_v7 = vld [vmem:[#allocation2 + $0x20] sm:$0xff]  }
 0x1d1   : > { %v808_v14 = vadd.f32 %v1683_v57, %v807_v13  ;;  %1923 = vmatpush3.bf16.msra.mxu0 %v2072_v52  ;;  %v826_v15 = vmax.f32 %v816_v11, 0.0  ;;  %1957 = vmatpush3.bf16.msra.mxu1 %v2089_v1 }
 0x1d2   : > { %1924 = vmatprep.subr.bf16.mxu0 %v2073_v9  ;;  %1958 = vmatprep.subr.bf16.mxu1 %v2090_v2 }
 0x1d3   : > { %v824_v18 = vmax.f32 %v808_v14, 0.0  ;;  %v830_v21 = vpack.c.bf16 %v826_v15, %v825_v19  ;;  %v1717_v19 = vld [vmem:[%s2558_s10] ss:$0 sm:$0xff] }
 0x1d5   : > { %v829_v20 = vpack.c.bf16 %v824_v18, %v823_v17  ;;  %1925 = vmatpush3.bf16.msra.mxu0 %v2073_v9  ;;  %1959 = vmatpush3.bf16.msra.mxu1 %v2090_v2  ;;  %v1916_v9 = vpop.f32.mrf.mxu1 }
 0x1d6   : > { %1926 = vmatprep.subr.bf16.mxu0 %v2074_v16  ;;  %1960 = vmatprep.subr.bf16.mxu1 %v2091_v3 }
 0x1d7   : > { %1908 = vmatprep.mubr.bf16.mxu0 %v829_v20  ;;  %v1066_v10 = vpop.f32.mrf.mxu1 }
 0x1d8   : > { %1909 = vmatmul.mubr.bf16.gmra.mxu0 %v830_v21 }
 0x1d9   : > { %1927 = vmatpush3.bf16.msra.mxu0 %v2074_v16  ;;  %1961 = vmatpush3.bf16.msra.mxu1 %v2091_v3  ;;  %v1917_v11 = vpop.f32.mrf.mxu1 }
 0x1da   : > { %1928 = vmatprep.subr.bf16.mxu0 %v2075_v22 }
 0x1db   : > { %v1069_v12 = vpop.f32.mrf.mxu1 }
 0x1dd   : > { %1929 = vmatpush3.bf16.msra.mxu0 %v2075_v22  ;;  %v1920_v14 = vpop.f32.mrf.mxu1 }
 0x1de   : > { %1930 = vmatprep.subr.bf16.mxu0 %v2076_v23 }
 0x1df   : > { %v1082_v21 = vpop.f32.mrf.mxu1 }
 0x1e1   : > { %1931 = vmatpush3.bf16.msra.mxu0 %v2076_v23  ;;  %v1921_v30 = vpop.f32.mrf.mxu1 }
 0x1e2   : > { %1932 = vmatprep.subr.bf16.mxu0 %v2077_v24 }
 0x1e5   : > { %1933 = vmatpush3.bf16.msra.mxu0 %v2077_v24 }
 0x1e6   : > { %1934 = vmatprep.subr.bf16.mxu0 %v2078_v25 }
 0x1e9   : > { %1935 = vmatpush3.bf16.msra.mxu0 %v2078_v25 }
 0x1ea   : > { %1936 = vmatprep.subr.bf16.mxu0 %v2081_v28 }
 0x1ed   : > { %1937 = vmatpush3.bf16.msra.mxu0 %v2081_v28 }
 0x1ee   : > { %1970 = vmatprep.subr.bf16.mxu0 %v2092_v4 }
 0x290   : > { %v1906_v35 = vpop.f32.mrf.mxu0 }
 0x291   : > { %v945_v41 = vadd.f32 %v1906_v35, %v1692_v37 }
 0x292   : > { %v936_v36 = vpop.f32.mrf.mxu0 }
 0x293   : > { %v937_v39 = vadd.f32 %v1692_v37, %v936_v36  ;;  %v969_v48 = vmax.f32 %v945_v41, 0.0  ;;  %v1085_v41 = vpop.f32.mrf.mxu1 }
 0x294   : > { %v1907_v38 = vpop.f32.mrf.mxu0 }
 0x295   : > { %v948_v40 = vadd.f32 %v1907_v38, %v1692_v37  ;;  %v967_v46 = vmax.f32 %v937_v39, 0.0 }
 0x296   : > { %v939_v42 = vpop.f32.mrf.mxu0 }
 0x297   : > { %v940_v43 = vadd.f32 %v1692_v37, %v939_v42  ;;  %v970_v44 = vmax.f32 %v948_v40, 0.0 }
 0x298   : > { %v1910_v45 = vpop.f32.mrf.mxu0 }
 0x299   : > { %v968_v47 = vmax.f32 %v940_v43, 0.0  ;;  %v976_v51 = vpack.c.bf16 %v970_v44, %v969_v48  ;;  %v961_v55 = vadd.f32 %v1910_v45, %v1692_v37 }
 0x29a   : > { %v952_v49 = vpop.f32.mrf.mxu0 }
 0x29b   : > { %v975_v50 = vpack.c.bf16 %v968_v47, %v967_v46  ;;  %v953_v53 = vadd.f32 %v1692_v37, %v952_v49  ;;  %v973_v61 = vmax.f32 %v961_v55, 0.0  ;;  %v2098_v55 = vld [vmem:[#allocation2 + $0x8] sm:$0xff]  }
 0x29c   : > { %v1911_v52 = vpop.f32.mrf.mxu0 }
 0x29d   : > { %v964_v54 = vadd.f32 %v1911_v52, %v1692_v37  ;;  %1938 = vmatprep.mubr.bf16.mxu0 %v975_v50  ;;  %v971_v59 = vmax.f32 %v953_v53, 0.0 }
 0x29e   : > { %v955_v56 = vpop.f32.mrf.mxu0  ;;  %1939 = vmatmul.mubr.bf16.vlgmr.msra.gmra.mxu0 %v976_v51 }
 0x29f   : > { %v956_v57 = vadd.f32 %v1692_v37, %v955_v56  ;;  %v974_v58 = vmax.f32 %v964_v54, 0.0  ;;  %1971 = vmatpush3.bf16.msra.mxu0 %v2092_v4  ;;  %v2097_v54 = vld [vmem:[#allocation2 + $0x10] sm:$0xff]   ;;  %v2099_v56 = vld [vmem:[#allocation2] sm:$0xff]  }
 0x2a0   : > { %1972 = vmatprep.subr.bf16.mxu0 %v2093_v5 }
 0x2a1   : > { %v972_v60 = vmax.f32 %v956_v57, 0.0  ;;  %v978_v63 = vpack.c.bf16 %v974_v58, %v973_v61 }
 0x2a3   : > { %v977_v62 = vpack.c.bf16 %v972_v60, %v971_v59  ;;  %1973 = vmatpush3.bf16.msra.mxu0 %v2093_v5  ;;  %v1718_v59 = vld [vmem:[%s2560_s12] ss:$0 sm:$0xff] }
 0x2a4   : > { %1974 = vmatprep.subr.bf16.mxu0 %v2094_v6 }
 0x2a5   : > { %1942 = vmatprep.mubr.bf16.mxu0 %v977_v62 }
 0x2a6   : > { %1943 = vmatmul.mubr.bf16.gmra.mxu0 %v978_v63 }
 0x2a7   : > { %1975 = vmatpush3.bf16.msra.mxu0 %v2094_v6 }
 0x2a8   : > { %1976 = vmatprep.subr.bf16.mxu0 %v2095_v7 }
 0x2ab   : > { %1977 = vmatpush3.bf16.msra.mxu0 %v2095_v7 }
 0x2ac   : > { %1978 = vmatprep.subr.bf16.mxu0 %v2096_v8 }
 0x2af   : > { %1979 = vmatpush3.bf16.msra.mxu0 %v2096_v8 }
 0x2b0   : > { %1980 = vmatprep.subr.bf16.mxu0 %v2097_v54 }
 0x2b3   : > { %1981 = vmatpush3.bf16.msra.mxu0 %v2097_v54 }
 0x2b4   : > { %1982 = vmatprep.subr.bf16.mxu0 %v2098_v55 }
 0x2b7   : > { %1983 = vmatpush3.bf16.msra.mxu0 %v2098_v55 }
 0x2b8   : > { %1984 = vmatprep.subr.bf16.mxu0 %v2099_v56 }
 0x2bb   : > { %1985 = vmatpush3.bf16.msra.mxu0 %v2099_v56 }
 0x35e   : > { %v1940_v13 = vpop.f32.mrf.mxu0 }
 0x35f   : > { %v1188_v17 = vadd.f32 %v1940_v13, %v1916_v9 }
 0x360   : > { %v1179_v15 = vpop.f32.mrf.mxu0 }
 0x361   : > { %v1180_v16 = vadd.f32 %v1179_v15, %v1066_v10  ;;  %v1219_v26 = vadd.f32 %v1717_v19, %v1188_v17 }
 0x362   : > { %v1941_v18 = vpop.f32.mrf.mxu0 }
 0x363   : > { %v1191_v20 = vadd.f32 %v1941_v18, %v1917_v11  ;;  %v1217_v23 = vadd.f32 %v1717_v19, %v1180_v16  ;;  %v1227_v35 = vmax.f32 %v1219_v26, 0.0 }
 0x364   : > { %v1182_v22 = vpop.f32.mrf.mxu0 }
 0x365   : > { %v1220_v24 = vadd.f32 %v1717_v19, %v1191_v20  ;;  %v1183_v25 = vadd.f32 %v1182_v22, %v1069_v12  ;;  %v1225_v32 = vmax.f32 %v1217_v23, 0.0  ;;  %v1727_v23 = vld [vmem:[%s2562_s14] ss:$0 sm:$0xff] }
 0x366   : > { %v1944_v27 = vpop.f32.mrf.mxu0 }
 0x367   : > { %v1218_v28 = vadd.f32 %v1717_v19, %v1183_v25  ;;  %v1228_v29 = vmax.f32 %v1220_v24, 0.0  ;;  %v1204_v36 = vadd.f32 %v1944_v27, %v1920_v14 }
 0x368   : > { %v1195_v31 = vpop.f32.mrf.mxu0 }
 0x369   : > { %v1226_v33 = vmax.f32 %v1218_v28, 0.0  ;;  %v1196_v34 = vadd.f32 %v1195_v31, %v1082_v21  ;;  %v1234_v40 = vpack.c.bf16 %v1228_v29, %v1227_v35  ;;  %v1223_v46 = vadd.f32 %v1717_v19, %v1204_v36 }
 0x36a   : > { %v1945_v37 = vpop.f32.mrf.mxu0 }
 0x36b   : > { %v1207_v38 = vadd.f32 %v1945_v37, %v1921_v30  ;;  %v1233_v39 = vpack.c.bf16 %v1226_v33, %v1225_v32  ;;  %v1221_v43 = vadd.f32 %v1717_v19, %v1196_v34  ;;  %v1231_v51 = vmax.f32 %v1223_v46, 0.0 }
 0x36c   : > { %v1198_v42 = vpop.f32.mrf.mxu0 }
 0x36d   : > { %v1224_v44 = vadd.f32 %v1717_v19, %v1207_v38  ;;  %v1199_v45 = vadd.f32 %v1198_v42, %v1085_v41  ;;  %1962 = vmatprep.mubr.bf16.mxu1 %v1233_v39  ;;  %v1229_v49 = vmax.f32 %v1221_v43, 0.0 }
 0x36e   : > { %1963 = vmatmul.mubr.bf16.vlgmr.msra.gmra.mxu1 %v1234_v40 }
 0x36f   : > { %v1222_v47 = vadd.f32 %v1717_v19, %v1199_v45  ;;  %v1232_v48 = vmax.f32 %v1224_v44, 0.0 }
 0x371   : > { %v1230_v50 = vmax.f32 %v1222_v47, 0.0  ;;  %v1236_v53 = vpack.c.bf16 %v1232_v48, %v1231_v51 }
 0x373   : > { %v1235_v52 = vpack.c.bf16 %v1230_v50, %v1229_v49 }
 0x375   : > { %1966 = vmatprep.mubr.bf16.mxu1 %v1235_v52 }
 0x376   : > { %1967 = vmatmul.mubr.bf16.gmra.mxu1 %v1236_v53 }
 0x42e   : > { %v1964_v57 = vpop.f32.mrf.mxu1 }
 0x42f   : > { %v1351_v63 = vadd.f32 %v1964_v57, %v1718_v59 }
 0x430   : > { %v1342_v58 = vpop.f32.mrf.mxu1 }
 0x431   : > { %v1343_v61 = vadd.f32 %v1718_v59, %v1342_v58  ;;  %v1375_v6 = vmax.f32 %v1351_v63, 0.0 }
 0x432   : > { %v1965_v60 = vpop.f32.mrf.mxu1 }
 0x433   : > { %v1354_v62 = vadd.f32 %v1965_v60, %v1718_v59  ;;  %v1373_v4 = vmax.f32 %v1343_v61, 0.0 }
 0x434   : > { %v1345_v0 = vpop.f32.mrf.mxu1 }
 0x435   : > { %v1346_v1 = vadd.f32 %v1718_v59, %v1345_v0  ;;  %v1376_v2 = vmax.f32 %v1354_v62, 0.0 }
 0x436   : > { %v1968_v3 = vpop.f32.mrf.mxu1 }
 0x437   : > { %v1374_v5 = vmax.f32 %v1346_v1, 0.0  ;;  %v1382_v9 = vpack.c.bf16 %v1376_v2, %v1375_v6  ;;  %v1367_v13 = vadd.f32 %v1968_v3, %v1718_v59 }
 0x438   : > { %v1358_v7 = vpop.f32.mrf.mxu1 }
 0x439   : > { %v1381_v8 = vpack.c.bf16 %v1374_v5, %v1373_v4  ;;  %v1359_v11 = vadd.f32 %v1718_v59, %v1358_v7  ;;  %v1379_v19 = vmax.f32 %v1367_v13, 0.0 }
 0x43a   : > { %v1969_v10 = vpop.f32.mrf.mxu1 }
 0x43b   : > { %v1370_v12 = vadd.f32 %v1969_v10, %v1718_v59  ;;  %1986 = vmatprep.mubr.bf16.mxu0 %v1381_v8  ;;  %v1377_v17 = vmax.f32 %v1359_v11, 0.0 }
 0x43c   : > { %v1361_v14 = vpop.f32.mrf.mxu1  ;;  %1987 = vmatmul.mubr.bf16.vlgmr.msra.gmra.mxu0 %v1382_v9 }
 0x43d   : > { %v1362_v15 = vadd.f32 %v1718_v59, %v1361_v14  ;;  %v1380_v16 = vmax.f32 %v1370_v12, 0.0 }
 0x43f   : > { %v1378_v18 = vmax.f32 %v1362_v15, 0.0  ;;  %v1384_v21 = vpack.c.bf16 %v1380_v16, %v1379_v19 }
 0x441   : > { %v1383_v20 = vpack.c.bf16 %v1378_v18, %v1377_v17 }
 0x443   : > { %1990 = vmatprep.mubr.bf16.mxu0 %v1383_v20 }
 0x444   : > { %1991 = vmatmul.mubr.bf16.gmra.mxu0 %v1384_v21 }
 0x4fc   : > { %v1988_v22 = vpop.f32.mrf.mxu0 }
 0x4fd   : > { %v1499_v26 = vadd.f32 %v1988_v22, %v1727_v23 }
 0x4fe   : > { %v1490_v24 = vpop.f32.mrf.mxu0 }
 0x4ff   : > { %v1491_v29 = vadd.f32 %v1727_v23, %v1490_v24 }
 0x500   : > { %v1989_v25 = vpop.f32.mrf.mxu0 }
 0x501   : > { %v1502_v27 = vadd.f32 %v1989_v25, %v1727_v23 }
 0x502   : > { %v1493_v28 = vpop.f32.mrf.mxu0 }
 0x503   : > { %v1766_v30 = vpack.c.bf16 %v1502_v27, %v1499_v26  ;;  %v1494_v31 = vadd.f32 %v1727_v23, %v1493_v28 }
 0x504   : > { %v1992_v32 = vpop.f32.mrf.mxu0 }
 0x505   : > { %1778 = vst [vmem:[%s519_s30 + $0x8] sm:$0xff] %v1766_v30   ;;  %v1761_v33 = vpack.c.bf16 %v1494_v31, %v1491_v29  ;;  %v1515_v36 = vadd.f32 %v1992_v32, %v1727_v23 }
 0x506   : > { %v1506_v34 = vpop.f32.mrf.mxu0 }
 0x507   : > { %1762 = vst [vmem:[%s519_s30] sm:$0xff] %v1761_v33   ;;  %v1507_v39 = vadd.f32 %v1727_v23, %v1506_v34 }
 0x508   : > { %v1993_v35 = vpop.f32.mrf.mxu0 }
 0x509   : > { %v1518_v37 = vadd.f32 %v1993_v35, %v1727_v23 }
 0x50a   : > { %v1509_v38 = vpop.f32.mrf.mxu0 }
 0x50b   : > { %v1776_v40 = vpack.c.bf16 %v1518_v37, %v1515_v36  ;;  %v1510_v41 = vadd.f32 %v1727_v23, %v1509_v38 }
 0x50d   : > { %1780 = vst [vmem:[%s519_s30 + $0x18] sm:$0xff] %v1776_v40   ;;  %v1771_v42 = vpack.c.bf16 %v1510_v41, %v1507_v39 }
 0x50f   : > { %1779 = vst [vmem:[%s519_s30 + $0x10] sm:$0xff] %v1771_v42  }
 0x510   : > { %2139 = shalt.err (!%p2136_p0)
}
 0x511   : > { %s2140_s0 = scalar_lea.hbm %s2504_s20, 512  ;;  %s2144_s26 = scalar_lea.hbm %s2563_s15, 2048 }
 0x512   : > { %p2141_p1 = scmp.ne.s32.totalorder %s2504_s20, %s2140_s0  ;;  %p2145_p4 = scmp.lt.s32.totalorder %s2504_s20, %s2563_s15 }
 0x513   : > { %p2146_p7 = scmp.lt.s32.totalorder %s2144_s26, %s2140_s0 }
 0x514   : > { %p2142_p2 = pnand %p2141_p1, %p2316_p5 }
 0x515   : > { %p2147_p8 = por %p2146_p7, %p2145_p4 }
 0x516   : > { %p2143_p3 = pneg %p2142_p2 }
 0x518   : > { %p2148_p6 = pnand %p2147_p8, %p2143_p3 }
 0x51a   : > { %2151 = shalt.err (!%p2148_p6)
}
 0x51b   : > { %s2196_s22 = smov 64   ;;  %s2197_s16 = smov 4  }
 0x51c   : > { %2000 = dma.vmem_to_hbm [thread:$0]  (%p2316_p5), %s2499_s17, 512, %s2504_s20, %s2508_s27, %s2196_s22, %s2196_s22, %s2197_s16  }
 0x51d PF: > { %p2012_p9 = scmp.ge.s32.totalorder %s2190_s21, 2  ;;  %s1590_s25 = sand.u32 1, %s2178_s18  }
 0x51e   : > { %p2576_p10 = scmp.ne.s32.totalorder %s2571_s29, 0  ;;  %s1591_s1 = scalar_lea.sflag [#allocation4], %s1590_s25 }
 0x520   : > { %p2007_p11 = pnand %p2012_p9, %p2576_p10 }
 0x522   : > { %p2008_p12 = pneg %p2007_p11 }
 0x524   : > { %2173 = dma.done.wait (%p2008_p12), %s1591_s1, 512  }
 0x525   : > { %2175 = vsyncadd (%p2008_p12), %s1591_s1, 4294966784  ;;  %s2577_s0 = sld [smem:[#allocation8_spill]]  ;;  %p26_p13 = scmp.ge.s32.totalorder %s2303_s24, 6  }
 0x526   : > { %s2578_s20 = sld [smem:[#allocation9_spill]]  ;;  %s2579_s18 = smov %s2182_s19 }
 0x527   : > { %s2581_s21 = smov %s2303_s24  ;;  %28 = sbr.rel (!%p26_p13) target bundleno = 8 (0x8), region = 123 }
 0x52b   : > { %s2580_s19 = smov %s2577_s0 }
 0x52c   :  { %1596 = vsyncpa [#allocation3], 1 }
 0x52d   :  { %1598 = vsyncpa [#allocation3 + $0x1], 1 }
 0x52e   :  { %1599 = vsyncpa [#allocation4], 1 }
 0x52f   :  { %1601 = vsyncpa [#allocation4 + $0x1], 1 }

// kernel: tpu_custom_call.1
= control target key start
LH: loop header
LB: loop body
LE: loop exit
PB: predicated region body
PF: predicated region fallthrough
CT: control target
= control target key end

     0   :  { %s2548_s0 = inlined_call_operand.vmem [shape: bf16[256,20], index: 0, kind: input, shape index: {}]   ;;  %s2549_s1 = inlined_call_operand.vmem [shape: bf16[256,4], index: 1, kind: input, shape index: {}]   ;;  %s2550_s2 = inlined_call_operand.vmem [shape: bf16[20,128], index: 2, kind: input, shape index: {}]   ;;  %s2551_s3 = inlined_call_operand.vmem [shape: f32[1,128], index: 3, kind: input, shape index: {}]   ;;  %s2552_s4 = inlined_call_operand.vmem [shape: bf16[128,128], index: 4, kind: input, shape index: {}]   ;;  %s2553_s5 = inlined_call_operand.vmem [shape: f32[1,128], index: 5, kind: input, shape index: {}]   ;;  %s2554_s6 = inlined_call_operand.vmem [shape: bf16[128,128], index: 6, kind: input, shape index: {}]   ;;  %s2555_s7 = inlined_call_operand.vmem [shape: f32[1,128], index: 7, kind: input, shape index: {}]   ;;  %s2556_s8 = inlined_call_operand.vmem [shape: bf16[128,128], index: 8, kind: input, shape index: {}]   ;;  %s2557_s9 = inlined_call_operand.vmem [shape: bf16[4,128], index: 9, kind: input, shape index: {}]   ;;  %s2558_s10 = inlined_call_operand.vmem [shape: f32[1,128], index: 10, kind: input, shape index: {}]   ;;  %s2559_s11 = inlined_call_operand.vmem [shape: bf16[128,128], index: 11, kind: input, shape index: {}]   ;;  %s2560_s12 = inlined_call_operand.vmem [shape: f32[1,128], index: 12, kind: input, shape index: {}]   ;;  %s2561_s13 = inlined_call_operand.hbm [shape: bf16[128,128], index: 13, kind: input, shape index: {}]   ;;  %s2562_s14 = inlined_call_operand.vmem [shape: f32[1,128], index: 14, kind: input, shape index: {}]   ;;  %s2563_s15 = inlined_call_operand.hbm [shape: bf16[256,128], index: 15, kind: output, shape index: {}]  }
   0x1   :  { %2565 = sst [smem:[#allocation10_spill]] %s2548_s0 }
   0x2   :  { %2566 = sst [smem:[#allocation11_spill]] %s2549_s1 }
   0x3   :  { %2567 = sst [smem:[#allocation12_spill]] %s2561_s13 }
   0x4   :  { %20 = vsyncpa [#allocation3], 0 }
   0x5   :  { %21 = vsyncpa [#allocation4], 0 }
   0x6   :  { %23 = vsyncpa [#allocation4 + $0x1], 0  ;;  %s2278_s18 = smov 0   ;;  %s2280_s19 = smov 0  }
   0x7   :  { %s2282_s20 = smov 0   ;;  %s2284_s21 = smov 0  }
   0x8 LB: > { %2568 = sst [smem:[#allocation8_spill]] %s2186_s20  ;;  %s2299_s22 = sadd.s32 4294967295, %s2190_s21   ;;  %s2190_s21 = sphi %s2284_s21, %s2581_s21   ;;  %s2186_s20 = sphi %s2282_s20, %s2578_s20   ;;  %s2182_s19 = sphi %s2280_s19, %s2580_s19   ;;  %s2178_s18 = sphi %s2278_s18, %s2579_s18  }
   0x9   : > { %s1661_s23 = sadd.s32 4294967294, %s2190_s21   ;;  %s2303_s24 = sadd.s32 1, %s2190_s21  }
   0xa   : > { %s361_s25 = sadd.s32 1, %s2186_s20  ;;  %s358_s26 = ssub.s32 %s2190_s21, %s2303_s24 }
   0xb   : > { %p371_p0 = scmp.ne.s32.totalorder %s2186_s20, %s2182_s19  ;;  %p359_p1 = scmp.eq.s32.totalorder %s358_s26, 0 }
   0xc   : > { %p372_p2 = scmp.eq.s32.totalorder %s2299_s22, 3  ;;  %p377_p3 = scmp.ne.s32.totalorder %s2182_s19, %s2178_s18 }
   0xd   : > { %p378_p4 = scmp.eq.s32.totalorder %s1661_s23, 3  ;;  %p1662_p7 = scmp.ge.s32.totalorder %s2190_s21, 1 }
   0xe   : > { %s2314_s27 = scalar_select %p359_p1, %s2186_s20, %s361_s25  }
   0xf   : > { %p2316_p5 = por %p372_p2, %p371_p0  ;;  %p2320_p6 = por %p378_p4, %p377_p3 }
  0x10   : > { %2569 = sst [smem:[#allocation9_spill]] %s2314_s27  ;;  %p385_p8 = scmp.lt.s32.totalorder %s2190_s21, 5 }
  0x11   : > { %s2571_s29 = scalar_select %p2320_p6, 1, 0 }
  0x12   : > { %p2010_p9 = scmp.eq.s32.totalorder %s2299_s22, 0  ;;  %p2327_p10 = pnand %p1662_p7, %p385_p8 }
  0x13   : > { %s2192_s16 = smov [#allocation2]  }
  0x14   : > { %s430_s17 = sshll.u32 %s2192_s16, 4  ;;  %p2002_p11 = pneg %p2327_p10  ;;  %s431_s17 = int_to_ptr.vmem [resolvable:$true] %s430_s17 }
  0x15   : > { %s2111_s23 = scalar_lea.vmem %s431_s17, 1024  ;;  %p2119_p3 = scmp.lt.s32.totalorder %s431_s17, %s431_s17 }
  0x16   : > { %p2003_p12 = pnand %p2010_p9, %p2002_p11  ;;  %p2112_p0 = scmp.ne.s32.totalorder %s431_s17, %s2111_s23 }
  0x17   : > { %p2120_p4 = scmp.lt.s32.totalorder %s2111_s23, %s2111_s23 }
  0x18   : > { %p2102_p13 = pneg %p2003_p12 }
  0x19   : > { %p2121_p6 = por %p2120_p4, %p2119_p3 }
  0x1a   : > { %p2114_p1 = pnand %p2112_p0, %p2102_p13 }
  0x1c   : > { %p2115_p2 = pneg %p2114_p1 }
  0x1e   : > { %p2122_p7 = pnand %p2121_p6, %p2115_p2 }
  0x20   : > { %2125 = shalt.err (!%p2122_p7)
}
  0x21   : > { %s2193_s25 = smov 64   ;;  %s2194_s26 = smov 4  }
  0x22   : > { %s2573_s13 = sld [smem:[#allocation12_spill]] }
  0x24   : > { %467 = sbr.rel (%p2327_p10) target bundleno = 1309 (0x51d), region = 80 }
  0x28   : > { %2005 = dma.hbm_to_vmem [thread:$0]  (!%p2003_p12), %s2573_s13, 1024, %s431_s17, [#allocation3], %s2193_s25, %s2193_s25, %s2194_s26  }
  0x29   : > { %2169 = dma.done.wait (%p2010_p9), [#allocation3], 1024  }
  0x2a   : > { %2171 = vsyncadd (%p2010_p9), [#allocation3], 4294966272  ;;  %s1668_s16 = sshll.u32 %s2299_s22, 3  ;;  %vm602_vm0 = vcmask 1041408   ;;  %s2574_s0 = sld [smem:[#allocation10_spill]]  ;;  %vm589_vm1 = vcmask 162816  }
  0x2b   : > { %p521_p8 = scmp.lt.s32.totalorder %s1668_s16, 31  ;;  %v2050_v0 = vld [vmem:[%s2550_s2 + $0x8] ss:$0 sps:$4 sm:$0x33]   ;;  %v2051_v1 = vld [vmem:[%s2550_s2] sm:$0xff]   ;;  %v2056_v5 = vld [vmem:[%s2552_s4 + $0x38] sm:$0xff]  }
  0x2c   : > { %1994 = vmatprep.subr.msk.bf16.mxu1 %vm602_vm0, %v2050_v0  ;;  %v604_v2 = vsel %vm602_vm0, %v2050_v0, 0  ;;  %v2057_v7 = vld [vmem:[%s2552_s4 + $0x30] sm:$0xff]   ;;  %v2058_v8 = vld [vmem:[%s2552_s4 + $0x28] sm:$0xff]   ;;  %v2059_v10 = vld [vmem:[%s2552_s4 + $0x20] sm:$0xff]   ;;  %s2575_s1 = sld [smem:[#allocation11_spill]]  ;;  %vm1016_vm2 = vcmask 31744  }
  0x2d   : > { %s2583_s16 = smov (!%p521_p8, %s1668_s16), 31  ;;  %1853 = vmatpush3.bf16.msra.mxu1 %v604_v2  ;;  %v2060_v11 = vld [vmem:[%s2552_s4 + $0x18] sm:$0xff]   ;;  %v2061_v12 = vld [vmem:[%s2552_s4 + $0x10] sm:$0xff]   ;;  %v2062_v13 = vld [vmem:[%s2552_s4 + $0x8] sm:$0xff]   ;;  %s2195_s13 = smov [#allocation5]  }
  0x2e   : > { %s1669_s23 = sshll.u32 %s2583_s16, 2  ;;  %1854 = vmatprep.subr.bf16.mxu1 %v2051_v1  ;;  %v2063_v14 = vld [vmem:[%s2552_s4] sm:$0xff]   ;;  %v2064_v15 = vld [vmem:[%s2554_s6 + $0x38] sm:$0xff]   ;;  %v2065_v16 = vld [vmem:[%s2554_s6 + $0x30] sm:$0xff]  }
  0x2f   : > { %1888 = vmatprep.subr.bf16.mxu0 %v2064_v15  ;;  %v2066_v17 = vld [vmem:[%s2554_s6 + $0x28] sm:$0xff]   ;;  %v2067_v18 = vld [vmem:[%s2554_s6 + $0x20] sm:$0xff]   ;;  %v2068_v19 = vld [vmem:[%s2554_s6 + $0x18] sm:$0xff]  }
  0x30   : > { %s524_s30 = scalar_lea.vmem %s2574_s0, %s1669_s23  ;;  %1889 = vmatpush3.bf16.msra.mxu0 %v2064_v15  ;;  %v1672_v22 = vld [vmem:[%s2551_s3] ss:$0 sm:$0xff]  ;;  %v2069_v49 = vld [vmem:[%s2554_s6 + $0x10] sm:$0xff]   ;;  %v2070_v50 = vld [vmem:[%s2554_s6 + $0x8] sm:$0xff]   ;;  %s517_s0 = sand.u32 1, %s2182_s19  }
  0x31   : > { %v2052_v3 = vld [vmem:[%s524_s30] sm:$0xff]   ;;  %v2053_v4 = vld [vmem:[%s524_s30 + $0x8] sm:$0xff]   ;;  %1855 = vmatpush3.bf16.msra.mxu1 %v2051_v1  ;;  %v2054_v6 = vld [vmem:[%s524_s30 + $0x10] sm:$0xff]   ;;  %1890 = vmatprep.subr.bf16.mxu0 %v2065_v16  ;;  %s1667_s16 = sshll.u32 %s517_s0, 5  ;;  %s2508_s27 = scalar_lea.sflag [#allocation4], %s517_s0 }
  0x32   : > { %1856 = vmatprep.mubr.msk.bf16.mxu1 %vm589_vm1, %v2052_v3  ;;  %1864 = vmatprep.subr.bf16.mxu1 %v2056_v5  ;;  %v2055_v9 = vld [vmem:[%s524_s30 + $0x18] sm:$0xff]   ;;  %s2385_s30 = scalar_lea.vmem %s2575_s1, %s1669_s23  ;;  %v2071_v51 = vld [vmem:[%s2554_s6] sm:$0xff]   ;;  %s1757_s23 = sshll.u32 %s2299_s22, 9 }
  0x33   : > { %v2072_v52 = vld [vmem:[%s2556_s8 + $0x38] sm:$0xff]   ;;  %v995_v53 = vld [vmem:[%s2557_s9] sm:$0x3]  ;;  %s2504_s20 = scalar_lea.hbm %s2563_s15, %s1757_s23 }
  0x34   : > { %1857 = vmatmul.mubr.msk.bf16.vlgmr.msra.gmra.mxu1 %vm589_vm1, %v2053_v4  ;;  %1891 = vmatpush3.bf16.msra.mxu0 %v2065_v16  ;;  %v1030_v54 = vsel %vm602_vm0, %v995_v53, 0  ;;  %v1683_v57 = vld [vmem:[%s2553_s5] ss:$0 sm:$0xff]  ;;  %v2074_v16 = vld [vmem:[%s2556_s8 + $0x28] sm:$0xff]  }
  0x35   : > { %1860 = vmatprep.mubr.msk.bf16.mxu1 %vm589_vm1, %v2054_v6  ;;  %1865 = vmatpush3.bf16.msra.mxu1 %v2056_v5 }
  0x36   : > { %1866 = vmatprep.subr.bf16.mxu1 %v2057_v7  ;;  %1892 = vmatprep.subr.bf16.mxu0 %v2066_v17 }
  0x38   : > { %1893 = vmatpush3.bf16.msra.mxu0 %v2066_v17 }
  0x39   : > { %1867 = vmatpush3.bf16.msra.mxu1 %v2057_v7  ;;  %1894 = vmatprep.subr.bf16.mxu0 %v2067_v18 }
  0x3a   : > { %1868 = vmatprep.subr.bf16.mxu1 %v2058_v8 }
  0x3c   : > { %1861 = vmatmul.mubr.msk.bf16.gmra.mxu1 %vm589_vm1, %v2055_v9  ;;  %1895 = vmatpush3.bf16.msra.mxu0 %v2067_v18  ;;  %v2073_v9 = vld [vmem:[%s2556_s8 + $0x30] sm:$0xff]  }
  0x3d   : > { %1869 = vmatpush3.bf16.msra.mxu1 %v2058_v8  ;;  %1896 = vmatprep.subr.bf16.mxu0 %v2068_v19 }
  0x3e   : > { %1870 = vmatprep.subr.bf16.mxu1 %v2059_v10 }
  0x40   : > { %1897 = vmatpush3.bf16.msra.mxu0 %v2068_v19 }
  0x41   : > { %1871 = vmatpush3.bf16.msra.mxu1 %v2059_v10  ;;  %1898 = vmatprep.subr.bf16.mxu0 %v2069_v49 }
  0x42   : > { %1872 = vmatprep.subr.bf16.mxu1 %v2060_v11 }
  0x44   : > { %1899 = vmatpush3.bf16.msra.mxu0 %v2069_v49 }
  0x45   : > { %1873 = vmatpush3.bf16.msra.mxu1 %v2060_v11  ;;  %1900 = vmatprep.subr.bf16.mxu0 %v2070_v50 }
  0x46   : > { %1874 = vmatprep.subr.bf16.mxu1 %v2061_v12 }
  0x48   : > { %1901 = vmatpush3.bf16.msra.mxu0 %v2070_v50 }
  0x49   : > { %1875 = vmatpush3.bf16.msra.mxu1 %v2061_v12  ;;  %1902 = vmatprep.subr.bf16.mxu0 %v2071_v51 }
  0x4a   : > { %1876 = vmatprep.subr.bf16.mxu1 %v2062_v13 }
  0x4c   : > { %1903 = vmatpush3.bf16.msra.mxu0 %v2071_v51 }
  0x4d   : > { %1877 = vmatpush3.bf16.msra.mxu1 %v2062_v13  ;;  %1922 = vmatprep.subr.bf16.mxu0 %v2072_v52 }
  0x4e   : > { %1878 = vmatprep.subr.bf16.mxu1 %v2063_v14 }
  0x51   : > { %1879 = vmatpush3.bf16.msra.mxu1 %v2063_v14 }
  0x52   : > { %1995 = vmatprep.subr.msk.bf16.mxu1 %vm602_vm0, %v995_v53 }
  0xf4   : > { %v1858_v20 = vpop.f32.mrf.mxu1 }
  0xf5   : > { %v649_v26 = vadd.f32 %v1858_v20, %v1672_v22 }
  0xf6   : > { %v640_v21 = vpop.f32.mrf.mxu1 }
  0xf7   : > { %v641_v24 = vadd.f32 %v1672_v22, %v640_v21  ;;  %v673_v33 = vmax.f32 %v649_v26, 0.0  ;;  %v2079_v26 = vld [vmem:[%s2385_s30] sm:$0xff]  }
  0xf8   : > { %v1859_v23 = vpop.f32.mrf.mxu1 }
  0xf9   : > { %v652_v25 = vadd.f32 %v1859_v23, %v1672_v22  ;;  %v671_v31 = vmax.f32 %v641_v24, 0.0  ;;  %v2076_v23 = vld [vmem:[%s2556_s8 + $0x18] sm:$0xff]   ;;  %v2077_v24 = vld [vmem:[%s2556_s8 + $0x10] sm:$0xff]  }
  0xfa   : > { %v643_v27 = vpop.f32.mrf.mxu1 }
  0xfb   : > { %v644_v28 = vadd.f32 %v1672_v22, %v643_v27  ;;  %v674_v29 = vmax.f32 %v652_v25, 0.0  ;;  %v2078_v25 = vld [vmem:[%s2556_s8 + $0x8] sm:$0xff]  }
  0xfc   : > { %v1862_v30 = vpop.f32.mrf.mxu1  ;;  %v2080_v27 = vld [vmem:[%s2385_s30 + $0x8] sm:$0xff]  }
  0xfd   : > { %v672_v32 = vmax.f32 %v644_v28, 0.0  ;;  %v680_v36 = vpack.c.bf16 %v674_v29, %v673_v33  ;;  %v665_v40 = vadd.f32 %v1862_v30, %v1672_v22  ;;  %v2081_v28 = vld [vmem:[%s2556_s8] sm:$0xff]   ;;  %v2082_v29 = vld [vmem:[%s2385_s30 + $0x10] sm:$0xff]   ;;  %v2083_v30 = vld [vmem:[%s2385_s30 + $0x18] sm:$0xff]   ;;  %s519_s30 = scalar_lea.vmem [#allocation5], %s1667_s16  ;;  %s2130_s16 = sshll.u32 %s2195_s13, 4  ;;  %s2131_s16 = int_to_ptr.vmem [resolvable:$false] %s2130_s16 }
  0xfe   : > { %v656_v34 = vpop.f32.mrf.mxu1  ;;  %v2086_v33 = vld [vmem:[%s2559_s11 + $0x28] sm:$0xff]   ;;  %s1575_s17 = sshll.u32 %s519_s30, 4  ;;  %s2132_s25 = scalar_lea.vmem %s2131_s16, 1024  ;;  %s2499_s17 = int_to_ptr.vmem [resolvable:$true] %s1575_s17 }
  0xff   : > { %v679_v35 = vpack.c.bf16 %v672_v32, %v671_v31  ;;  %v657_v38 = vadd.f32 %v1672_v22, %v656_v34  ;;  %v677_v46 = vmax.f32 %v665_v40, 0.0  ;;  %v2084_v31 = vld [vmem:[%s2559_s11 + $0x38] sm:$0xff]   ;;  %v2085_v32 = vld [vmem:[%s2559_s11 + $0x30] sm:$0xff]   ;;  %v2087_v34 = vld [vmem:[%s2559_s11 + $0x20] sm:$0xff]   ;;  %s2126_s22 = scalar_lea.vmem %s2499_s17, 512  ;;  %p2133_p11 = scmp.lt.s32.totalorder %s2499_s17, %s2131_s16 }
 0x100   : > { %v1863_v37 = vpop.f32.mrf.mxu1  ;;  %p2127_p6 = scmp.ne.s32.totalorder %s2499_s17, %s2126_s22  ;;  %p2134_p12 = scmp.lt.s32.totalorder %s2132_s25, %s2126_s22 }
 0x101   : > { %v668_v39 = vadd.f32 %v1863_v37, %v1672_v22  ;;  %1880 = vmatprep.mubr.bf16.mxu1 %v679_v35  ;;  %v675_v44 = vmax.f32 %v657_v38, 0.0  ;;  %v1692_v37 = vld [vmem:[%s2555_s7] ss:$0 sm:$0xff] }
 0x102   : > { %v659_v41 = vpop.f32.mrf.mxu1  ;;  %1881 = vmatmul.mubr.bf16.vlgmr.msra.gmra.mxu1 %v680_v36  ;;  %p2128_p9 = pnand %p2127_p6, %p2316_p5  ;;  %p2135_p13 = por %p2134_p12, %p2133_p11 }
 0x103   : > { %v660_v42 = vadd.f32 %v1672_v22, %v659_v41  ;;  %v678_v43 = vmax.f32 %v668_v39, 0.0  ;;  %1913 = vmatpush3.bf16.msra.mxu1 %v1030_v54  ;;  %v2075_v22 = vld [vmem:[%s2556_s8 + $0x20] sm:$0xff]  }
 0x104   : > { %1946 = vmatprep.subr.bf16.mxu1 %v2084_v31  ;;  %p2129_p10 = pneg %p2128_p9 }
 0x105   : > { %v676_v45 = vmax.f32 %v660_v42, 0.0  ;;  %v682_v48 = vpack.c.bf16 %v678_v43, %v677_v46 }
 0x106   : > { %p2136_p0 = pnand %p2135_p13, %p2129_p10 }
 0x107   : > { %v681_v47 = vpack.c.bf16 %v676_v45, %v675_v44 }
 0x109   : > { %1884 = vmatprep.mubr.bf16.mxu1 %v681_v47 }
 0x10a   : > { %1885 = vmatmul.mubr.bf16.gmra.mxu1 %v682_v48 }
 0x10b   : > { %1914 = vmatprep.mubr.msk.bf16.mxu1 %vm1016_vm2, %v2079_v26 }
 0x112   : > { %1915 = vmatmul.mubr.msk.bf16.vlgmr.msra.gmra.mxu1 %vm1016_vm2, %v2080_v27 }
 0x113   : > { %1918 = vmatprep.mubr.msk.bf16.mxu1 %vm1016_vm2, %v2082_v29  ;;  %1947 = vmatpush3.bf16.msra.mxu1 %v2084_v31 }
 0x114   : > { %1948 = vmatprep.subr.bf16.mxu1 %v2085_v32 }
 0x117   : > { %1949 = vmatpush3.bf16.msra.mxu1 %v2085_v32 }
 0x118   : > { %1950 = vmatprep.subr.bf16.mxu1 %v2086_v33 }
 0x11a   : > { %1919 = vmatmul.mubr.msk.bf16.gmra.mxu1 %vm1016_vm2, %v2083_v30 }
 0x11b   : > { %1951 = vmatpush3.bf16.msra.mxu1 %v2086_v33 }
 0x11c   : > { %1952 = vmatprep.subr.bf16.mxu1 %v2087_v34 }
 0x11f   : > { %1953 = vmatpush3.bf16.msra.mxu1 %v2087_v34 }
 0x1c2   : > { %v1882_v55 = vpop.f32.mrf.mxu1 }
 0x1c3   : > { %v797_v61 = vadd.f32 %v1882_v55, %v1683_v57 }
 0x1c4   : > { %v788_v56 = vpop.f32.mrf.mxu1 }
 0x1c5   : > { %v789_v59 = vadd.f32 %v1683_v57, %v788_v56  ;;  %v821_v4 = vmax.f32 %v797_v61, 0.0 }
 0x1c6   : > { %v1883_v58 = vpop.f32.mrf.mxu1 }
 0x1c7   : > { %v800_v60 = vadd.f32 %v1883_v58, %v1683_v57  ;;  %v819_v2 = vmax.f32 %v789_v59, 0.0 }
 0x1c8   : > { %v791_v62 = vpop.f32.mrf.mxu1 }
 0x1c9   : > { %v792_v63 = vadd.f32 %v1683_v57, %v791_v62  ;;  %v822_v0 = vmax.f32 %v800_v60, 0.0 }
 0x1ca   : > { %v1886_v1 = vpop.f32.mrf.mxu1 }
 0x1cb   : > { %v820_v3 = vmax.f32 %v792_v63, 0.0  ;;  %v828_v7 = vpack.c.bf16 %v822_v0, %v821_v4  ;;  %v813_v12 = vadd.f32 %v1886_v1, %v1683_v57  ;;  %v2088_v0 = vld [vmem:[%s2559_s11 + $0x18] sm:$0xff]   ;;  %v2089_v1 = vld [vmem:[%s2559_s11 + $0x10] sm:$0xff]  }
 0x1cc   : > { %v804_v5 = vpop.f32.mrf.mxu1  ;;  %1954 = vmatprep.subr.bf16.mxu1 %v2088_v0  ;;  %v2092_v4 = vld [vmem:[#allocation2 + $0x38] sm:$0xff]  }
 0x1cd   : > { %v827_v6 = vpack.c.bf16 %v820_v3, %v819_v2  ;;  %v805_v10 = vadd.f32 %v1683_v57, %v804_v5  ;;  %v825_v19 = vmax.f32 %v813_v12, 0.0  ;;  %1955 = vmatpush3.bf16.msra.mxu1 %v2088_v0  ;;  %v2090_v2 = vld [vmem:[%s2559_s11 + $0x8] sm:$0xff]   ;;  %v2091_v3 = vld [vmem:[%s2559_s11] sm:$0xff]   ;;  %v2093_v5 = vld [vmem:[#allocation2 + $0x30] sm:$0xff]  }
 0x1ce   : > { %v1887_v8 = vpop.f32.mrf.mxu1  ;;  %1956 = vmatprep.subr.bf16.mxu1 %v2089_v1 }
 0x1cf   : > { %v816_v11 = vadd.f32 %v1887_v8, %v1683_v57  ;;  %1904 = vmatprep.mubr.bf16.mxu0 %v827_v6  ;;  %v823_v17 = vmax.f32 %v805_v10, 0.0  ;;  %v2094_v6 = vld [vmem:[#allocation2 + $0x28] sm:$0xff]   ;;  %v2096_v8 = vld [vmem:[#allocation2 + $0x18] sm:$0xff]  }
 0x1d0   : > { %v807_v13 = vpop.f32.mrf.mxu1  ;;  %1905 = vmatmul.mubr.bf16.vlgmr.msra.gmra.mxu0 %v828_v7  ;;  %v2095_v7 = vld [vmem:[#allocation2 + $0x20] sm:$0xff]  }
 0x1d1   : > { %v808_v14 = vadd.f32 %v1683_v57, %v807_v13  ;;  %1923 = vmatpush3.bf16.msra.mxu0 %v2072_v52  ;;  %v826_v15 = vmax.f32 %v816_v11, 0.0  ;;  %1957 = vmatpush3.bf16.msra.mxu1 %v2089_v1 }
 0x1d2   : > { %1924 = vmatprep.subr.bf16.mxu0 %v2073_v9  ;;  %1958 = vmatprep.subr.bf16.mxu1 %v2090_v2 }
 0x1d3   : > { %v824_v18 = vmax.f32 %v808_v14, 0.0  ;;  %v830_v21 = vpack.c.bf16 %v826_v15, %v825_v19  ;;  %v1717_v19 = vld [vmem:[%s2558_s10] ss:$0 sm:$0xff] }
 0x1d5   : > { %v829_v20 = vpack.c.bf16 %v824_v18, %v823_v17  ;;  %1925 = vmatpush3.bf16.msra.mxu0 %v2073_v9  ;;  %1959 = vmatpush3.bf16.msra.mxu1 %v2090_v2  ;;  %v1916_v9 = vpop.f32.mrf.mxu1 }
 0x1d6   : > { %1926 = vmatprep.subr.bf16.mxu0 %v2074_v16  ;;  %1960 = vmatprep.subr.bf16.mxu1 %v2091_v3 }
 0x1d7   : > { %1908 = vmatprep.mubr.bf16.mxu0 %v829_v20  ;;  %v1066_v10 = vpop.f32.mrf.mxu1 }
 0x1d8   : > { %1909 = vmatmul.mubr.bf16.gmra.mxu0 %v830_v21 }
 0x1d9   : > { %1927 = vmatpush3.bf16.msra.mxu0 %v2074_v16  ;;  %1961 = vmatpush3.bf16.msra.mxu1 %v2091_v3  ;;  %v1917_v11 = vpop.f32.mrf.mxu1 }
 0x1da   : > { %1928 = vmatprep.subr.bf16.mxu0 %v2075_v22 }
 0x1db   : > { %v1069_v12 = vpop.f32.mrf.mxu1 }
 0x1dd   : > { %1929 = vmatpush3.bf16.msra.mxu0 %v2075_v22  ;;  %v1920_v14 = vpop.f32.mrf.mxu1 }
 0x1de   : > { %1930 = vmatprep.subr.bf16.mxu0 %v2076_v23 }
 0x1df   : > { %v1082_v21 = vpop.f32.mrf.mxu1 }
 0x1e1   : > { %1931 = vmatpush3.bf16.msra.mxu0 %v2076_v23  ;;  %v1921_v30 = vpop.f32.mrf.mxu1 }
 0x1e2   : > { %1932 = vmatprep.subr.bf16.mxu0 %v2077_v24 }
 0x1e5   : > { %1933 = vmatpush3.bf16.msra.mxu0 %v2077_v24 }
 0x1e6   : > { %1934 = vmatprep.subr.bf16.mxu0 %v2078_v25 }
 0x1e9   : > { %1935 = vmatpush3.bf16.msra.mxu0 %v2078_v25 }
 0x1ea   : > { %1936 = vmatprep.subr.bf16.mxu0 %v2081_v28 }
 0x1ed   : > { %1937 = vmatpush3.bf16.msra.mxu0 %v2081_v28 }
 0x1ee   : > { %1970 = vmatprep.subr.bf16.mxu0 %v2092_v4 }
 0x290   : > { %v1906_v35 = vpop.f32.mrf.mxu0 }
 0x291   : > { %v945_v41 = vadd.f32 %v1906_v35, %v1692_v37 }
 0x292   : > { %v936_v36 = vpop.f32.mrf.mxu0 }
 0x293   : > { %v937_v39 = vadd.f32 %v1692_v37, %v936_v36  ;;  %v969_v48 = vmax.f32 %v945_v41, 0.0  ;;  %v1085_v41 = vpop.f32.mrf.mxu1 }
 0x294   : > { %v1907_v38 = vpop.f32.mrf.mxu0 }
 0x295   : > { %v948_v40 = vadd.f32 %v1907_v38, %v1692_v37  ;;  %v967_v46 = vmax.f32 %v937_v39, 0.0 }
 0x296   : > { %v939_v42 = vpop.f32.mrf.mxu0 }
 0x297   : > { %v940_v43 = vadd.f32 %v1692_v37, %v939_v42  ;;  %v970_v44 = vmax.f32 %v948_v40, 0.0 }
 0x298   : > { %v1910_v45 = vpop.f32.mrf.mxu0 }
 0x299   : > { %v968_v47 = vmax.f32 %v940_v43, 0.0  ;;  %v976_v51 = vpack.c.bf16 %v970_v44, %v969_v48  ;;  %v961_v55 = vadd.f32 %v1910_v45, %v1692_v37 }
 0x29a   : > { %v952_v49 = vpop.f32.mrf.mxu0 }
 0x29b   : > { %v975_v50 = vpack.c.bf16 %v968_v47, %v967_v46  ;;  %v953_v53 = vadd.f32 %v1692_v37, %v952_v49  ;;  %v973_v61 = vmax.f32 %v961_v55, 0.0  ;;  %v2098_v55 = vld [vmem:[#allocation2 + $0x8] sm:$0xff]  }
 0x29c   : > { %v1911_v52 = vpop.f32.mrf.mxu0 }
 0x29d   : > { %v964_v54 = vadd.f32 %v1911_v52, %v1692_v37  ;;  %1938 = vmatprep.mubr.bf16.mxu0 %v975_v50  ;;  %v971_v59 = vmax.f32 %v953_v53, 0.0 }
 0x29e   : > { %v955_v56 = vpop.f32.mrf.mxu0  ;;  %1939 = vmatmul.mubr.bf16.vlgmr.msra.gmra.mxu0 %v976_v51 }
 0x29f   : > { %v956_v57 = vadd.f32 %v1692_v37, %v955_v56  ;;  %v974_v58 = vmax.f32 %v964_v54, 0.0  ;;  %1971 = vmatpush3.bf16.msra.mxu0 %v2092_v4  ;;  %v2097_v54 = vld [vmem:[#allocation2 + $0x10] sm:$0xff]   ;;  %v2099_v56 = vld [vmem:[#allocation2] sm:$0xff]  }
 0x2a0   : > { %1972 = vmatprep.subr.bf16.mxu0 %v2093_v5 }
 0x2a1   : > { %v972_v60 = vmax.f32 %v956_v57, 0.0  ;;  %v978_v63 = vpack.c.bf16 %v974_v58, %v973_v61 }
 0x2a3   : > { %v977_v62 = vpack.c.bf16 %v972_v60, %v971_v59  ;;  %1973 = vmatpush3.bf16.msra.mxu0 %v2093_v5  ;;  %v1718_v59 = vld [vmem:[%s2560_s12] ss:$0 sm:$0xff] }
 0x2a4   : > { %1974 = vmatprep.subr.bf16.mxu0 %v2094_v6 }
 0x2a5   : > { %1942 = vmatprep.mubr.bf16.mxu0 %v977_v62 }
 0x2a6   : > { %1943 = vmatmul.mubr.bf16.gmra.mxu0 %v978_v63 }
 0x2a7   : > { %1975 = vmatpush3.bf16.msra.mxu0 %v2094_v6 }
 0x2a8   : > { %1976 = vmatprep.subr.bf16.mxu0 %v2095_v7 }
 0x2ab   : > { %1977 = vmatpush3.bf16.msra.mxu0 %v2095_v7 }
 0x2ac   : > { %1978 = vmatprep.subr.bf16.mxu0 %v2096_v8 }
 0x2af   : > { %1979 = vmatpush3.bf16.msra.mxu0 %v2096_v8 }
 0x2b0   : > { %1980 = vmatprep.subr.bf16.mxu0 %v2097_v54 }
 0x2b3   : > { %1981 = vmatpush3.bf16.msra.mxu0 %v2097_v54 }
 0x2b4   : > { %1982 = vmatprep.subr.bf16.mxu0 %v2098_v55 }
 0x2b7   : > { %1983 = vmatpush3.bf16.msra.mxu0 %v2098_v55 }
 0x2b8   : > { %1984 = vmatprep.subr.bf16.mxu0 %v2099_v56 }
 0x2bb   : > { %1985 = vmatpush3.bf16.msra.mxu0 %v2099_v56 }
 0x35e   : > { %v1940_v13 = vpop.f32.mrf.mxu0 }
 0x35f   : > { %v1188_v17 = vadd.f32 %v1940_v13, %v1916_v9 }
 0x360   : > { %v1179_v15 = vpop.f32.mrf.mxu0 }
 0x361   : > { %v1180_v16 = vadd.f32 %v1179_v15, %v1066_v10  ;;  %v1219_v26 = vadd.f32 %v1717_v19, %v1188_v17 }
 0x362   : > { %v1941_v18 = vpop.f32.mrf.mxu0 }
 0x363   : > { %v1191_v20 = vadd.f32 %v1941_v18, %v1917_v11  ;;  %v1217_v23 = vadd.f32 %v1717_v19, %v1180_v16  ;;  %v1227_v35 = vmax.f32 %v1219_v26, 0.0 }
 0x364   : > { %v1182_v22 = vpop.f32.mrf.mxu0 }
 0x365   : > { %v1220_v24 = vadd.f32 %v1717_v19, %v1191_v20  ;;  %v1183_v25 = vadd.f32 %v1182_v22, %v1069_v12  ;;  %v1225_v32 = vmax.f32 %v1217_v23, 0.0  ;;  %v1727_v23 = vld [vmem:[%s2562_s14] ss:$0 sm:$0xff] }
 0x366   : > { %v1944_v27 = vpop.f32.mrf.mxu0 }
 0x367   : > { %v1218_v28 = vadd.f32 %v1717_v19, %v1183_v25  ;;  %v1228_v29 = vmax.f32 %v1220_v24, 0.0  ;;  %v1204_v36 = vadd.f32 %v1944_v27, %v1920_v14 }
 0x368   : > { %v1195_v31 = vpop.f32.mrf.mxu0 }
 0x369   : > { %v1226_v33 = vmax.f32 %v1218_v28, 0.0  ;;  %v1196_v34 = vadd.f32 %v1195_v31, %v1082_v21  ;;  %v1234_v40 = vpack.c.bf16 %v1228_v29, %v1227_v35  ;;  %v1223_v46 = vadd.f32 %v1717_v19, %v1204_v36 }
 0x36a   : > { %v1945_v37 = vpop.f32.mrf.mxu0 }
 0x36b   : > { %v1207_v38 = vadd.f32 %v1945_v37, %v1921_v30  ;;  %v1233_v39 = vpack.c.bf16 %v1226_v33, %v1225_v32  ;;  %v1221_v43 = vadd.f32 %v1717_v19, %v1196_v34  ;;  %v1231_v51 = vmax.f32 %v1223_v46, 0.0 }
 0x36c   : > { %v1198_v42 = vpop.f32.mrf.mxu0 }
 0x36d   : > { %v1224_v44 = vadd.f32 %v1717_v19, %v1207_v38  ;;  %v1199_v45 = vadd.f32 %v1198_v42, %v1085_v41  ;;  %1962 = vmatprep.mubr.bf16.mxu1 %v1233_v39  ;;  %v1229_v49 = vmax.f32 %v1221_v43, 0.0 }
 0x36e   : > { %1963 = vmatmul.mubr.bf16.vlgmr.msra.gmra.mxu1 %v1234_v40 }
 0x36f   : > { %v1222_v47 = vadd.f32 %v1717_v19, %v1199_v45  ;;  %v1232_v48 = vmax.f32 %v1224_v44, 0.0 }
 0x371   : > { %v1230_v50 = vmax.f32 %v1222_v47, 0.0  ;;  %v1236_v53 = vpack.c.bf16 %v1232_v48, %v1231_v51 }
 0x373   : > { %v1235_v52 = vpack.c.bf16 %v1230_v50, %v1229_v49 }
 0x375   : > { %1966 = vmatprep.mubr.bf16.mxu1 %v1235_v52 }
 0x376   : > { %1967 = vmatmul.mubr.bf16.gmra.mxu1 %v1236_v53 }
 0x42e   : > { %v1964_v57 = vpop.f32.mrf.mxu1 }
 0x42f   : > { %v1351_v63 = vadd.f32 %v1964_v57, %v1718_v59 }
 0x430   : > { %v1342_v58 = vpop.f32.mrf.mxu1 }
 0x431   : > { %v1343_v61 = vadd.f32 %v1718_v59, %v1342_v58  ;;  %v1375_v6 = vmax.f32 %v1351_v63, 0.0 }
 0x432   : > { %v1965_v60 = vpop.f32.mrf.mxu1 }
 0x433   : > { %v1354_v62 = vadd.f32 %v1965_v60, %v1718_v59  ;;  %v1373_v4 = vmax.f32 %v1343_v61, 0.0 }
 0x434   : > { %v1345_v0 = vpop.f32.mrf.mxu1 }
 0x435   : > { %v1346_v1 = vadd.f32 %v1718_v59, %v1345_v0  ;;  %v1376_v2 = vmax.f32 %v1354_v62, 0.0 }
 0x436   : > { %v1968_v3 = vpop.f32.mrf.mxu1 }
 0x437   : > { %v1374_v5 = vmax.f32 %v1346_v1, 0.0  ;;  %v1382_v9 = vpack.c.bf16 %v1376_v2, %v1375_v6  ;;  %v1367_v13 = vadd.f32 %v1968_v3, %v1718_v59 }
 0x438   : > { %v1358_v7 = vpop.f32.mrf.mxu1 }
 0x439   : > { %v1381_v8 = vpack.c.bf16 %v1374_v5, %v1373_v4  ;;  %v1359_v11 = vadd.f32 %v1718_v59, %v1358_v7  ;;  %v1379_v19 = vmax.f32 %v1367_v13, 0.0 }
 0x43a   : > { %v1969_v10 = vpop.f32.mrf.mxu1 }
 0x43b   : > { %v1370_v12 = vadd.f32 %v1969_v10, %v1718_v59  ;;  %1986 = vmatprep.mubr.bf16.mxu0 %v1381_v8  ;;  %v1377_v17 = vmax.f32 %v1359_v11, 0.0 }
 0x43c   : > { %v1361_v14 = vpop.f32.mrf.mxu1  ;;  %1987 = vmatmul.mubr.bf16.vlgmr.msra.gmra.mxu0 %v1382_v9 }
 0x43d   : > { %v1362_v15 = vadd.f32 %v1718_v59, %v1361_v14  ;;  %v1380_v16 = vmax.f32 %v1370_v12, 0.0 }
 0x43f   : > { %v1378_v18 = vmax.f32 %v1362_v15, 0.0  ;;  %v1384_v21 = vpack.c.bf16 %v1380_v16, %v1379_v19 }
 0x441   : > { %v1383_v20 = vpack.c.bf16 %v1378_v18, %v1377_v17 }
 0x443   : > { %1990 = vmatprep.mubr.bf16.mxu0 %v1383_v20 }
 0x444   : > { %1991 = vmatmul.mubr.bf16.gmra.mxu0 %v1384_v21 }
 0x4fc   : > { %v1988_v22 = vpop.f32.mrf.mxu0 }
 0x4fd   : > { %v1499_v26 = vadd.f32 %v1988_v22, %v1727_v23 }
 0x4fe   : > { %v1490_v24 = vpop.f32.mrf.mxu0 }
 0x4ff   : > { %v1491_v29 = vadd.f32 %v1727_v23, %v1490_v24 }
 0x500   : > { %v1989_v25 = vpop.f32.mrf.mxu0 }
 0x501   : > { %v1502_v27 = vadd.f32 %v1989_v25, %v1727_v23 }
 0x502   : > { %v1493_v28 = vpop.f32.mrf.mxu0 }
 0x503   : > { %v1766_v30 = vpack.c.bf16 %v1502_v27, %v1499_v26  ;;  %v1494_v31 = vadd.f32 %v1727_v23, %v1493_v28 }
 0x504   : > { %v1992_v32 = vpop.f32.mrf.mxu0 }
 0x505   : > { %1778 = vst [vmem:[%s519_s30 + $0x8] sm:$0xff] %v1766_v30   ;;  %v1761_v33 = vpack.c.bf16 %v1494_v31, %v1491_v29  ;;  %v1515_v36 = vadd.f32 %v1992_v32, %v1727_v23 }
 0x506   : > { %v1506_v34 = vpop.f32.mrf.mxu0 }
 0x507   : > { %1762 = vst [vmem:[%s519_s30] sm:$0xff] %v1761_v33   ;;  %v1507_v39 = vadd.f32 %v1727_v23, %v1506_v34 }
 0x508   : > { %v1993_v35 = vpop.f32.mrf.mxu0 }
 0x509   : > { %v1518_v37 = vadd.f32 %v1993_v35, %v1727_v23 }
 0x50a   : > { %v1509_v38 = vpop.f32.mrf.mxu0 }
 0x50b   : > { %v1776_v40 = vpack.c.bf16 %v1518_v37, %v1515_v36  ;;  %v1510_v41 = vadd.f32 %v1727_v23, %v1509_v38 }
 0x50d   : > { %1780 = vst [vmem:[%s519_s30 + $0x18] sm:$0xff] %v1776_v40   ;;  %v1771_v42 = vpack.c.bf16 %v1510_v41, %v1507_v39 }
 0x50f   : > { %1779 = vst [vmem:[%s519_s30 + $0x10] sm:$0xff] %v1771_v42  }
 0x510   : > { %2139 = shalt.err (!%p2136_p0)
}
 0x511   : > { %s2140_s0 = scalar_lea.hbm %s2504_s20, 512  ;;  %s2144_s26 = scalar_lea.hbm %s2563_s15, 2048 }
 0x512   : > { %p2141_p1 = scmp.ne.s32.totalorder %s2504_s20, %s2140_s0  ;;  %p2145_p4 = scmp.lt.s32.totalorder %s2504_s20, %s2563_s15 }
 0x513   : > { %p2146_p7 = scmp.lt.s32.totalorder %s2144_s26, %s2140_s0 }
 0x514   : > { %p2142_p2 = pnand %p2141_p1, %p2316_p5 }
 0x515   : > { %p2147_p8 = por %p2146_p7, %p2145_p4 }
 0x516   : > { %p2143_p3 = pneg %p2142_p2 }
 0x518   : > { %p2148_p6 = pnand %p2147_p8, %p2143_p3 }
 0x51a   : > { %2151 = shalt.err (!%p2148_p6)
}
 0x51b   : > { %s2196_s22 = smov 64   ;;  %s2197_s16 = smov 4  }
 0x51c   : > { %2000 = dma.vmem_to_hbm [thread:$0]  (%p2316_p5), %s2499_s17, 512, %s2504_s20, %s2508_s27, %s2196_s22, %s2196_s22, %s2197_s16  }
 0x51d PF: > { %p2012_p9 = scmp.ge.s32.totalorder %s2190_s21, 2  ;;  %s1590_s25 = sand.u32 1, %s2178_s18  }
 0x51e   : > { %p2576_p10 = scmp.ne.s32.totalorder %s2571_s29, 0  ;;  %s1591_s1 = scalar_lea.sflag [#allocation4], %s1590_s25 }
 0x520   : > { %p2007_p11 = pnand %p2012_p9, %p2576_p10 }
 0x522   : > { %p2008_p12 = pneg %p2007_p11 }
 0x524   : > { %2173 = dma.done.wait (%p2008_p12), %s1591_s1, 512  }
 0x525   : > { %2175 = vsyncadd (%p2008_p12), %s1591_s1, 4294966784  ;;  %s2577_s0 = sld [smem:[#allocation8_spill]]  ;;  %p26_p13 = scmp.ge.s32.totalorder %s2303_s24, 6  }
 0x526   : > { %s2578_s20 = sld [smem:[#allocation9_spill]]  ;;  %s2579_s18 = smov %s2182_s19 }
 0x527   : > { %s2581_s21 = smov %s2303_s24  ;;  %28 = sbr.rel (!%p26_p13) target bundleno = 8 (0x8), region = 123 }
 0x52b   : > { %s2580_s19 = smov %s2577_s0 }
 0x52c   :  { %1596 = vsyncpa [#allocation3], 1 }
 0x52d   :  { %1598 = vsyncpa [#allocation3 + $0x1], 1 }
 0x52e   :  { %1599 = vsyncpa [#allocation4], 1 }
 0x52f   :  { %1601 = vsyncpa [#allocation4 + $0x1], 1 }

</bundles_post_ra>
